<compile_context>
chip_gen: v6e
topology: v6e:2x2x1
jax: 0.10.0
libtpu: 0.0.40
codegen_flags: <defaults>
</compile_context>

<pallas_src>
import math
from functools import partial

import jax
import jax.numpy as jnp
from jax.experimental import pallas as pl
from jax.experimental.pallas import tpu as pltpu

# ----------------------------- config ---------------------------------------
D_MODEL = 32      # d_model
NHEAD = 4
HEAD_DIM = D_MODEL // NHEAD
D_FF = 64         # dim_feedforward
NUM_LAYERS = 2
SEQ = 8
BATCH = 2
LN_EPS = 1e-5


# ----------------------------- kernel ---------------------------------------
def _layer_norm(x, gamma, beta, eps):
    mu = jnp.mean(x, axis=-1, keepdims=True)
    var = jnp.mean((x - mu) ** 2, axis=-1, keepdims=True)
    return (x - mu) * jax.lax.rsqrt(var + eps) * gamma + beta


def encoder_stack_kernel(
    x_ref, pos_ref,
    wqk_ref, wv_ref, wo_ref, w1_ref, w2_ref, vec_ref,
    o_ref,
    *, num_layers, nhead, head_dim, d_model, d_ff,
):
    """One grid step == one batch element, run through ALL encoder layers."""
    x = x_ref[0]        # (S, D)
    pos = pos_ref[0]    # (S, D)
    scale = 1.0 / math.sqrt(head_dim)

    src = x
    for l in range(num_layers):              # static, unrolled layer loop
        wqk = wqk_ref[l]                     # (D, 2D)   [wq | wk]
        wv = wv_ref[l]                       # (D, D)
        wo = wo_ref[l]                       # (D, D)
        w1 = w1_ref[l]                       # (D, F)
        w2 = w2_ref[l]                       # (F, D)
        vecs = vec_ref[l]                    # (9, VW) packed small vectors

        b_qk = vecs[0:1, : 2 * d_model]      # (1, 2D)  [bq | bk]
        bv = vecs[1:2, :d_model]
        bo = vecs[2:3, :d_model]
        b1 = vecs[3:4, :d_ff]
        b2 = vecs[4:5, :d_model]
        g1 = vecs[5:6, :d_model]
        be1 = vecs[6:7, :d_model]
        g2 = vecs[7:8, :d_model]
        be2 = vecs[8:9, :d_model]

        # ---- self-attention: q = k = src + pos, value = src ----------------
        qk_in = src + pos
        qk = jnp.dot(qk_in, wqk, preferred_element_type=jnp.float32) + b_qk   # (S, 2D)
        v = jnp.dot(src, wv, preferred_element_type=jnp.float32) + bv         # (S, D)

        # multi-head attention with the output projection folded into the head loop
        attn = None
        for h in range(nhead):               # static head loop
            lo, hi = h * head_dim, (h + 1) * head_dim
            qh = qk[:, lo:hi]                           # (S, hd)
            kh = qk[:, d_model + lo: d_model + hi]      # (S, hd)
            vh = v[:, lo:hi]                            # (S, hd)
            # contract last dims directly; no kh.T materialization.
            s = jnp.einsum('qd,kd->qk', qh, kh,
                           preferred_element_type=jnp.float32) * scale         # (S, S)
            s = s - jnp.max(s, axis=-1, keepdims=True)
            p = jnp.exp(s)
            p = p * pl.reciprocal(jnp.sum(p, axis=-1, keepdims=True), approx=True)
            oh = jnp.dot(p, vh, preferred_element_type=jnp.float32)            # (S, hd)
            contrib = jnp.dot(oh, wo[lo:hi, :], preferred_element_type=jnp.float32)
            attn = contrib if attn is None else attn + contrib
        attn = attn + bo

        # ---- residual + LayerNorm1 -----------------------------------------
        src = _layer_norm(src + attn, g1, be1, LN_EPS)

        # ---- feed-forward ----------------------------------------------------
        h1 = jnp.maximum(jnp.dot(src, w1, preferred_element_type=jnp.float32) + b1, 0.0)
        ff = jnp.dot(h1, w2, preferred_element_type=jnp.float32) + b2

        # ---- residual + LayerNorm2 -------------------------------------------
        src = _layer_norm(src + ff, g2, be2, LN_EPS)

        # per-layer `memory` output
        o_ref[l, 0] = src


# ----------------------------- wrapper ---------------------------------------
def _pack_layer_params(layer_params_list):
    """Stack per-layer weights with a leading L axis; pack all small vectors
    into one (L, 9, VW) buffer (rows: b_qk | bv | bo | b1 | b2 | g1 | be1 | g2 | be2)."""
    d = layer_params_list[0]["wq"].shape[0]
    f = layer_params_list[0]["w1"].shape[1]
    vw = max(2 * d, f)

    def row(vec):
        vec = vec.reshape(1, -1)
        return jnp.pad(vec, ((0, 0), (0, vw - vec.shape[1])))

    wqk, wv, wo, w1, w2, vecs = [], [], [], [], [], []
    for p in layer_params_list:
        wqk.append(jnp.concatenate([p["wq"], p["wk"]], axis=1))
        wv.append(p["wv"])
        wo.append(p["wo"])
        w1.append(p["w1"])
        w2.append(p["w2"])
        vecs.append(jnp.concatenate([
            row(jnp.concatenate([p["bq"], p["bk"]], axis=1)),
            row(p["bv"]), row(p["bo"]), row(p["b1"]), row(p["b2"]),
            row(p["g1"]), row(p["be1"]), row(p["g2"]), row(p["be2"]),
        ], axis=0))

    stack = lambda xs: jnp.stack(xs, axis=0)
    return stack(wqk), stack(wv), stack(wo), stack(w1), stack(w2), stack(vecs)


@jax.jit
def transformer_encoder_forward(src_sbd, pos_sbd, layer_params_list):
    """Mirrors TransformerEncoder.forward: returns the list `memory` of per-layer
    outputs, each of shape (S, B, D).  Single fused pallas_call for all layers."""
    S, B, D = src_sbd.shape
    L = len(layer_params_list)
    F = layer_params_list[0]["w1"].shape[1]

    # One layout change for the whole stack (not per layer): (S,B,D) -> (B,S,D).
    x_bsd = jnp.transpose(src_sbd, (1, 0, 2))
    pos_bsd = jnp.transpose(pos_sbd, (1, 0, 2))
    wqk, wv, wo, w1, w2, vecs = _pack_layer_params(layer_params_list)

    kernel = partial(
        encoder_stack_kernel,
        num_layers=L, nhead=NHEAD, head_dim=D // NHEAD, d_model=D, d_ff=F,
    )

    def bsd_spec():
        return pl.BlockSpec((1, S, D), lambda b: (b, 0, 0))

    def resident_spec(shape):
        nd = len(shape)
        # Constant index_map: block stays resident in VMEM across the grid.
        return pl.BlockSpec(shape, lambda b, _nd=nd: (0,) * _nd)

    out = pl.pallas_call(
        kernel,
        grid=(B,),
        in_specs=[
            bsd_spec(), bsd_spec(),
            resident_spec(wqk.shape), resident_spec(wv.shape),
            resident_spec(wo.shape), resident_spec(w1.shape),
            resident_spec(w2.shape), resident_spec(vecs.shape),
        ],
        out_specs=pl.BlockSpec((L, 1, S, D), lambda b: (0, b, 0, 0)),
        out_shape=jax.ShapeDtypeStruct((L, B, S, D), jnp.float32),
        compiler_params=pltpu.CompilerParams(dimension_semantics=("parallel",)),
    )(x_bsd, pos_bsd, wqk, wv, wo, w1, w2, vecs)

    # memory[l] back in the reference (S, B, D) layout (single slice+transpose each,
    # fused into the same jit program; no per-layer HBM round-trips between kernels).
    return [jnp.transpose(out[l], (1, 0, 2)) for l in range(L)]


# ----------------------------- params ----------------------------------------
def init_layer_params(key, d_model, d_ff):
    ks = jax.random.split(key, 8)
    std = 0.02
    return {
        # attention in-proj (stored as x @ W, i.e. transposed vs torch)
        "wq": jax.random.normal(ks[0], (d_model, d_model), jnp.float32) * std,
        "wk": jax.random.normal(ks[1], (d_model, d_model), jnp.float32) * std,
        "wv": jax.random.normal(ks[2], (d_model, d_model), jnp.float32) * std,
        "bq": jnp.zeros((1, d_model), jnp.float32),
        "bk": jnp.zeros((1, d_model), jnp.float32),
        "bv": jnp.zeros((1, d_model), jnp.float32),
        # attention out-proj
        "wo": jax.random.normal(ks[3], (d_model, d_model), jnp.float32) * std,
        "bo": jnp.zeros((1, d_model), jnp.float32),
        # FFN
        "w1": jax.random.normal(ks[4], (d_model, d_ff), jnp.float32) * std,
        "b1": jnp.zeros((1, d_ff), jnp.float32),
        "w2": jax.random.normal(ks[5], (d_ff, d_model), jnp.float32) * std,
        "b2": jnp.zeros((1, d_model), jnp.float32),
        # LayerNorms
        "g1": jnp.ones((1, d_model), jnp.float32),
        "be1": jnp.zeros((1, d_model), jnp.float32),
        "g2": jnp.ones((1, d_model), jnp.float32),
        "be2": jnp.zeros((1, d_model), jnp.float32),
    }


# ----------------------------- main -------------------------------------------
if __name__ == "__main__":
    key = jax.random.PRNGKey(0)
    k_src, k_pos, k_params = jax.random.split(key, 3)

    # PyTorch layout: (S, B, D)
    src = jax.random.normal(k_src, (SEQ, BATCH, D_MODEL), jnp.float32)
    pos = jax.random.normal(k_pos, (SEQ, BATCH, D_MODEL), jnp.float32)

    layer_keys = jax.random.split(k_params, NUM_LAYERS)
    layer_params = [init_layer_params(k, D_MODEL, D_FF) for k in layer_keys]

    memory = transformer_encoder_forward(src, pos, layer_params)
    memory = [jax.block_until_ready(m) for m in memory]

    assert len(memory) == NUM_LAYERS
    for m in memory:
        assert m.shape == (SEQ, BATCH, D_MODEL)
        assert m.dtype == jnp.float32
        assert bool(jnp.all(jnp.isfinite(m)))

    print("KERNEL_OK")
</pallas_src>

<mosaic_0001>
module attributes {stable_mosaic.version = 11 : i64} {
  func.func @encoder_stack_kernel(%arg0: i32, %arg1: memref<1x8x32xf32, #tpu.memory_space<vmem>>, %arg2: memref<1x8x32xf32, #tpu.memory_space<vmem>>, %arg3: memref<2x32x64xf32, #tpu.memory_space<vmem>>, %arg4: memref<2x32x32xf32, #tpu.memory_space<vmem>>, %arg5: memref<2x32x32xf32, #tpu.memory_space<vmem>>, %arg6: memref<2x32x64xf32, #tpu.memory_space<vmem>>, %arg7: memref<2x64x32xf32, #tpu.memory_space<vmem>>, %arg8: memref<2x9x64xf32, #tpu.memory_space<vmem>>, %arg9: memref<2x1x8x32xf32, #tpu.memory_space<vmem>>) attributes {dimension_semantics = [#tpu.dimension_semantics<parallel>], iteration_bounds = array<i64: 2>, scalar_prefetch = 0 : i64, scratch_operands = 0 : i64, tpu.core_type = #tpu.core_type<tc>, window_params = [{transform_indices = @transform_0, window_bounds = array<i64: 1, 8, 32>}, {transform_indices = @transform_1, window_bounds = array<i64: 1, 8, 32>}, {pipeline_mode = #tpu.pipeline_mode<synchronous>, transform_indices = @transform_2, window_bounds = array<i64: 2, 32, 64>}, {pipeline_mode = #tpu.pipeline_mode<synchronous>, transform_indices = @transform_3, window_bounds = array<i64: 2, 32, 32>}, {pipeline_mode = #tpu.pipeline_mode<synchronous>, transform_indices = @transform_4, window_bounds = array<i64: 2, 32, 32>}, {pipeline_mode = #tpu.pipeline_mode<synchronous>, transform_indices = @transform_5, window_bounds = array<i64: 2, 32, 64>}, {pipeline_mode = #tpu.pipeline_mode<synchronous>, transform_indices = @transform_6, window_bounds = array<i64: 2, 64, 32>}, {pipeline_mode = #tpu.pipeline_mode<synchronous>, transform_indices = @transform_7, window_bounds = array<i64: 2, 9, 64>}, {transform_indices = @transform_8, window_bounds = array<i64: 2, 1, 8, 32>}]} {
    %c0 = arith.constant 0 : index
    %c0_0 = arith.constant 0 : index
    %c0_1 = arith.constant 0 : index
    %0 = vector.load %arg1[%c0, %c0_0, %c0_1] : memref<1x8x32xf32, #tpu.memory_space<vmem>>, vector<1x8x32xf32>
    %1 = vector.shape_cast %0 : vector<1x8x32xf32> to vector<8x32xf32>
    %c0_2 = arith.constant 0 : index
    %c0_3 = arith.constant 0 : index
    %c0_4 = arith.constant 0 : index
    %2 = vector.load %arg2[%c0_2, %c0_3, %c0_4] : memref<1x8x32xf32, #tpu.memory_space<vmem>>, vector<1x8x32xf32>
    %3 = vector.shape_cast %2 : vector<1x8x32xf32> to vector<8x32xf32>
    %c0_5 = arith.constant 0 : index
    %c0_6 = arith.constant 0 : index
    %c0_7 = arith.constant 0 : index
    %4 = vector.load %arg3[%c0_5, %c0_6, %c0_7] : memref<2x32x64xf32, #tpu.memory_space<vmem>>, vector<1x32x64xf32>
    %5 = vector.shape_cast %4 : vector<1x32x64xf32> to vector<32x64xf32>
    %c0_8 = arith.constant 0 : index
    %c0_9 = arith.constant 0 : index
    %c0_10 = arith.constant 0 : index
    %6 = vector.load %arg4[%c0_8, %c0_9, %c0_10] : memref<2x32x32xf32, #tpu.memory_space<vmem>>, vector<1x32x32xf32>
    %7 = vector.shape_cast %6 : vector<1x32x32xf32> to vector<32x32xf32>
    %c0_11 = arith.constant 0 : index
    %c0_12 = arith.constant 0 : index
    %c0_13 = arith.constant 0 : index
    %8 = vector.load %arg5[%c0_11, %c0_12, %c0_13] : memref<2x32x32xf32, #tpu.memory_space<vmem>>, vector<1x32x32xf32>
    %9 = vector.shape_cast %8 : vector<1x32x32xf32> to vector<32x32xf32>
    %c0_14 = arith.constant 0 : index
    %c0_15 = arith.constant 0 : index
    %c0_16 = arith.constant 0 : index
    %10 = vector.load %arg6[%c0_14, %c0_15, %c0_16] : memref<2x32x64xf32, #tpu.memory_space<vmem>>, vector<1x32x64xf32>
    %11 = vector.shape_cast %10 : vector<1x32x64xf32> to vector<32x64xf32>
    %c0_17 = arith.constant 0 : index
    %c0_18 = arith.constant 0 : index
    %c0_19 = arith.constant 0 : index
    %12 = vector.load %arg7[%c0_17, %c0_18, %c0_19] : memref<2x64x32xf32, #tpu.memory_space<vmem>>, vector<1x64x32xf32>
    %13 = vector.shape_cast %12 : vector<1x64x32xf32> to vector<64x32xf32>
    %c0_20 = arith.constant 0 : index
    %c0_21 = arith.constant 0 : index
    %c0_22 = arith.constant 0 : index
    %14 = vector.load %arg8[%c0_20, %c0_21, %c0_22] : memref<2x9x64xf32, #tpu.memory_space<vmem>>, vector<1x9x64xf32>
    %15 = vector.shape_cast %14 : vector<1x9x64xf32> to vector<9x64xf32>
    %16 = vector.extract_strided_slice %15 {offsets = [0, 0], sizes = [1, 64], strides = [1, 1]} : vector<9x64xf32> to vector<1x64xf32>
    %17 = vector.extract_strided_slice %15 {offsets = [1, 0], sizes = [1, 32], strides = [1, 1]} : vector<9x64xf32> to vector<1x32xf32>
    %18 = vector.extract_strided_slice %15 {offsets = [2, 0], sizes = [1, 32], strides = [1, 1]} : vector<9x64xf32> to vector<1x32xf32>
    %19 = vector.extract_strided_slice %15 {offsets = [3, 0], sizes = [1, 64], strides = [1, 1]} : vector<9x64xf32> to vector<1x64xf32>
    %20 = vector.extract_strided_slice %15 {offsets = [4, 0], sizes = [1, 32], strides = [1, 1]} : vector<9x64xf32> to vector<1x32xf32>
    %21 = vector.extract_strided_slice %15 {offsets = [5, 0], sizes = [1, 32], strides = [1, 1]} : vector<9x64xf32> to vector<1x32xf32>
    %22 = vector.extract_strided_slice %15 {offsets = [6, 0], sizes = [1, 32], strides = [1, 1]} : vector<9x64xf32> to vector<1x32xf32>
    %23 = vector.extract_strided_slice %15 {offsets = [7, 0], sizes = [1, 32], strides = [1, 1]} : vector<9x64xf32> to vector<1x32xf32>
    %24 = vector.extract_strided_slice %15 {offsets = [8, 0], sizes = [1, 32], strides = [1, 1]} : vector<9x64xf32> to vector<1x32xf32>
    %25 = arith.addf %1, %3 : vector<8x32xf32>
    %cst = arith.constant dense<0.000000e+00> : vector<8x64xf32>
    %26 = tpu.matmul %25, %5, %cst {dimension_numbers = #tpu.dot_dimension_numbers<[1], [0], [0], [1], [0, 0, 1, 1], [], []>} : vector<8x32xf32>, vector<32x64xf32>, vector<8x64xf32> -> vector<8x64xf32>
    %27 = vector.broadcast %16 : vector<1x64xf32> to vector<8x64xf32>
    %28 = arith.addf %26, %27 : vector<8x64xf32>
    %cst_23 = arith.constant dense<0.000000e+00> : vector<8x32xf32>
    %29 = tpu.matmul %1, %7, %cst_23 {dimension_numbers = #tpu.dot_dimension_numbers<[1], [0], [0], [1], [0, 0, 1, 1], [], []>} : vector<8x32xf32>, vector<32x32xf32>, vector<8x32xf32> -> vector<8x32xf32>
    %30 = vector.broadcast %17 : vector<1x32xf32> to vector<8x32xf32>
    %31 = arith.addf %29, %30 : vector<8x32xf32>
    %32 = vector.extract_strided_slice %28 {offsets = [0, 0], sizes = [8, 8], strides = [1, 1]} : vector<8x64xf32> to vector<8x8xf32>
    %33 = vector.extract_strided_slice %28 {offsets = [0, 32], sizes = [8, 8], strides = [1, 1]} : vector<8x64xf32> to vector<8x8xf32>
    %34 = vector.extract_strided_slice %31 {offsets = [0, 0], sizes = [8, 8], strides = [1, 1]} : vector<8x32xf32> to vector<8x8xf32>
    "tpu.trace_start"() <{level = 10 : i32, message = "qd,kd->qk"}> : () -> ()
    %cst_24 = arith.constant dense<0.000000e+00> : vector<8x8xf32>
    %35 = tpu.matmul %32, %33, %cst_24 {dimension_numbers = #tpu.dot_dimension_numbers<[1], [1], [0], [0], [0, 0, 1, 0], [], []>} : vector<8x8xf32>, vector<8x8xf32>, vector<8x8xf32> -> vector<8x8xf32>
    "tpu.trace_stop"() : () -> ()
    %cst_25 = arith.constant 0.353553385 : f32
    %36 = vector.broadcast %cst_25 : f32 to vector<8x8xf32>
    %37 = arith.mulf %35, %36 : vector<8x8xf32>
    %cst_26 = arith.constant dense<0xFF800000> : vector<8xf32>
    %38 = vector.multi_reduction <maximumf>, %37, %cst_26 [1] : vector<8x8xf32> to vector<8xf32>
    %39 = vector.shape_cast %38 : vector<8xf32> to vector<8x1xf32>
    %40 = vector.broadcast %39 : vector<8x1xf32> to vector<8x8xf32>
    %41 = arith.subf %37, %40 : vector<8x8xf32>
    %42 = math.exp %41 : vector<8x8xf32>
    %cst_27 = arith.constant dense<0.000000e+00> : vector<8xf32>
    %43 = vector.multi_reduction <add>, %42, %cst_27 [1] : vector<8x8xf32> to vector<8xf32>
    %44 = vector.shape_cast %43 : vector<8xf32> to vector<8x1xf32>
    %45 = tpu.reciprocal %44 {approx = true} : vector<8x1xf32> -> vector<8x1xf32>
    %46 = vector.broadcast %45 : vector<8x1xf32> to vector<8x8xf32>
    %47 = arith.mulf %42, %46 : vector<8x8xf32>
    %cst_28 = arith.constant dense<0.000000e+00> : vector<8x8xf32>
    %48 = tpu.matmul %47, %34, %cst_28 {dimension_numbers = #tpu.dot_dimension_numbers<[1], [0], [0], [1], [0, 0, 1, 1], [], []>} : vector<8x8xf32>, vector<8x8xf32>, vector<8x8xf32> -> vector<8x8xf32>
    %49 = vector.extract_strided_slice %9 {offsets = [0, 0], sizes = [8, 32], strides = [1, 1]} : vector<32x32xf32> to vector<8x32xf32>
    %cst_29 = arith.constant dense<0.000000e+00> : vector<8x32xf32>
    %50 = tpu.matmul %48, %49, %cst_29 {dimension_numbers = #tpu.dot_dimension_numbers<[1], [0], [0], [1], [0, 0, 1, 1], [], []>} : vector<8x8xf32>, vector<8x32xf32>, vector<8x32xf32> -> vector<8x32xf32>
    %51 = vector.extract_strided_slice %28 {offsets = [0, 8], sizes = [8, 8], strides = [1, 1]} : vector<8x64xf32> to vector<8x8xf32>
    %52 = vector.extract_strided_slice %28 {offsets = [0, 40], sizes = [8, 8], strides = [1, 1]} : vector<8x64xf32> to vector<8x8xf32>
    %53 = vector.extract_strided_slice %31 {offsets = [0, 8], sizes = [8, 8], strides = [1, 1]} : vector<8x32xf32> to vector<8x8xf32>
    "tpu.trace_start"() <{level = 10 : i32, message = "qd,kd->qk"}> : () -> ()
    %cst_30 = arith.constant dense<0.000000e+00> : vector<8x8xf32>
    %54 = tpu.matmul %51, %52, %cst_30 {dimension_numbers = #tpu.dot_dimension_numbers<[1], [1], [0], [0], [0, 0, 1, 0], [], []>} : vector<8x8xf32>, vector<8x8xf32>, vector<8x8xf32> -> vector<8x8xf32>
    "tpu.trace_stop"() : () -> ()
    %cst_31 = arith.constant 0.353553385 : f32
    %55 = vector.broadcast %cst_31 : f32 to vector<8x8xf32>
    %56 = arith.mulf %54, %55 : vector<8x8xf32>
    %cst_32 = arith.constant dense<0xFF800000> : vector<8xf32>
    %57 = vector.multi_reduction <maximumf>, %56, %cst_32 [1] : vector<8x8xf32> to vector<8xf32>
    %58 = vector.shape_cast %57 : vector<8xf32> to vector<8x1xf32>
    %59 = vector.broadcast %58 : vector<8x1xf32> to vector<8x8xf32>
    %60 = arith.subf %56, %59 : vector<8x8xf32>
    %61 = math.exp %60 : vector<8x8xf32>
    %cst_33 = arith.constant dense<0.000000e+00> : vector<8xf32>
    %62 = vector.multi_reduction <add>, %61, %cst_33 [1] : vector<8x8xf32> to vector<8xf32>
    %63 = vector.shape_cast %62 : vector<8xf32> to vector<8x1xf32>
    %64 = tpu.reciprocal %63 {approx = true} : vector<8x1xf32> -> vector<8x1xf32>
    %65 = vector.broadcast %64 : vector<8x1xf32> to vector<8x8xf32>
    %66 = arith.mulf %61, %65 : vector<8x8xf32>
    %cst_34 = arith.constant dense<0.000000e+00> : vector<8x8xf32>
    %67 = tpu.matmul %66, %53, %cst_34 {dimension_numbers = #tpu.dot_dimension_numbers<[1], [0], [0], [1], [0, 0, 1, 1], [], []>} : vector<8x8xf32>, vector<8x8xf32>, vector<8x8xf32> -> vector<8x8xf32>
    %68 = vector.extract_strided_slice %9 {offsets = [8, 0], sizes = [8, 32], strides = [1, 1]} : vector<32x32xf32> to vector<8x32xf32>
    %cst_35 = arith.constant dense<0.000000e+00> : vector<8x32xf32>
    %69 = tpu.matmul %67, %68, %cst_35 {dimension_numbers = #tpu.dot_dimension_numbers<[1], [0], [0], [1], [0, 0, 1, 1], [], []>} : vector<8x8xf32>, vector<8x32xf32>, vector<8x32xf32> -> vector<8x32xf32>
    %70 = arith.addf %50, %69 : vector<8x32xf32>
    %71 = vector.extract_strided_slice %28 {offsets = [0, 16], sizes = [8, 8], strides = [1, 1]} : vector<8x64xf32> to vector<8x8xf32>
    %72 = vector.extract_strided_slice %28 {offsets = [0, 48], sizes = [8, 8], strides = [1, 1]} : vector<8x64xf32> to vector<8x8xf32>
    %73 = vector.extract_strided_slice %31 {offsets = [0, 16], sizes = [8, 8], strides = [1, 1]} : vector<8x32xf32> to vector<8x8xf32>
    "tpu.trace_start"() <{level = 10 : i32, message = "qd,kd->qk"}> : () -> ()
    %cst_36 = arith.constant dense<0.000000e+00> : vector<8x8xf32>
    %74 = tpu.matmul %71, %72, %cst_36 {dimension_numbers = #tpu.dot_dimension_numbers<[1], [1], [0], [0], [0, 0, 1, 0], [], []>} : vector<8x8xf32>, vector<8x8xf32>, vector<8x8xf32> -> vector<8x8xf32>
    "tpu.trace_stop"() : () -> ()
    %cst_37 = arith.constant 0.353553385 : f32
    %75 = vector.broadcast %cst_37 : f32 to vector<8x8xf32>
    %76 = arith.mulf %74, %75 : vector<8x8xf32>
    %cst_38 = arith.constant dense<0xFF800000> : vector<8xf32>
    %77 = vector.multi_reduction <maximumf>, %76, %cst_38 [1] : vector<8x8xf32> to vector<8xf32>
    %78 = vector.shape_cast %77 : vector<8xf32> to vector<8x1xf32>
    %79 = vector.broadcast %78 : vector<8x1xf32> to vector<8x8xf32>
    %80 = arith.subf %76, %79 : vector<8x8xf32>
    %81 = math.exp %80 : vector<8x8xf32>
    %cst_39 = arith.constant dense<0.000000e+00> : vector<8xf32>
    %82 = vector.multi_reduction <add>, %81, %cst_39 [1] : vector<8x8xf32> to vector<8xf32>
    %83 = vector.shape_cast %82 : vector<8xf32> to vector<8x1xf32>
    %84 = tpu.reciprocal %83 {approx = true} : vector<8x1xf32> -> vector<8x1xf32>
    %85 = vector.broadcast %84 : vector<8x1xf32> to vector<8x8xf32>
    %86 = arith.mulf %81, %85 : vector<8x8xf32>
    %cst_40 = arith.constant dense<0.000000e+00> : vector<8x8xf32>
    %87 = tpu.matmul %86, %73, %cst_40 {dimension_numbers = #tpu.dot_dimension_numbers<[1], [0], [0], [1], [0, 0, 1, 1], [], []>} : vector<8x8xf32>, vector<8x8xf32>, vector<8x8xf32> -> vector<8x8xf32>
    %88 = vector.extract_strided_slice %9 {offsets = [16, 0], sizes = [8, 32], strides = [1, 1]} : vector<32x32xf32> to vector<8x32xf32>
    %cst_41 = arith.constant dense<0.000000e+00> : vector<8x32xf32>
    %89 = tpu.matmul %87, %88, %cst_41 {dimension_numbers = #tpu.dot_dimension_numbers<[1], [0], [0], [1], [0, 0, 1, 1], [], []>} : vector<8x8xf32>, vector<8x32xf32>, vector<8x32xf32> -> vector<8x32xf32>
    %90 = arith.addf %70, %89 : vector<8x32xf32>
    %91 = vector.extract_strided_slice %28 {offsets = [0, 24], sizes = [8, 8], strides = [1, 1]} : vector<8x64xf32> to vector<8x8xf32>
    %92 = vector.extract_strided_slice %28 {offsets = [0, 56], sizes = [8, 8], strides = [1, 1]} : vector<8x64xf32> to vector<8x8xf32>
    %93 = vector.extract_strided_slice %31 {offsets = [0, 24], sizes = [8, 8], strides = [1, 1]} : vector<8x32xf32> to vector<8x8xf32>
    "tpu.trace_start"() <{level = 10 : i32, message = "qd,kd->qk"}> : () -> ()
    %cst_42 = arith.constant dense<0.000000e+00> : vector<8x8xf32>
    %94 = tpu.matmul %91, %92, %cst_42 {dimension_numbers = #tpu.dot_dimension_numbers<[1], [1], [0], [0], [0, 0, 1, 0], [], []>} : vector<8x8xf32>, vector<8x8xf32>, vector<8x8xf32> -> vector<8x8xf32>
    "tpu.trace_stop"() : () -> ()
    %cst_43 = arith.constant 0.353553385 : f32
    %95 = vector.broadcast %cst_43 : f32 to vector<8x8xf32>
    %96 = arith.mulf %94, %95 : vector<8x8xf32>
    %cst_44 = arith.constant dense<0xFF800000> : vector<8xf32>
    %97 = vector.multi_reduction <maximumf>, %96, %cst_44 [1] : vector<8x8xf32> to vector<8xf32>
    %98 = vector.shape_cast %97 : vector<8xf32> to vector<8x1xf32>
    %99 = vector.broadcast %98 : vector<8x1xf32> to vector<8x8xf32>
    %100 = arith.subf %96, %99 : vector<8x8xf32>
    %101 = math.exp %100 : vector<8x8xf32>
    %cst_45 = arith.constant dense<0.000000e+00> : vector<8xf32>
    %102 = vector.multi_reduction <add>, %101, %cst_45 [1] : vector<8x8xf32> to vector<8xf32>
    %103 = vector.shape_cast %102 : vector<8xf32> to vector<8x1xf32>
    %104 = tpu.reciprocal %103 {approx = true} : vector<8x1xf32> -> vector<8x1xf32>
    %105 = vector.broadcast %104 : vector<8x1xf32> to vector<8x8xf32>
    %106 = arith.mulf %101, %105 : vector<8x8xf32>
    %cst_46 = arith.constant dense<0.000000e+00> : vector<8x8xf32>
    %107 = tpu.matmul %106, %93, %cst_46 {dimension_numbers = #tpu.dot_dimension_numbers<[1], [0], [0], [1], [0, 0, 1, 1], [], []>} : vector<8x8xf32>, vector<8x8xf32>, vector<8x8xf32> -> vector<8x8xf32>
    %108 = vector.extract_strided_slice %9 {offsets = [24, 0], sizes = [8, 32], strides = [1, 1]} : vector<32x32xf32> to vector<8x32xf32>
    %cst_47 = arith.constant dense<0.000000e+00> : vector<8x32xf32>
    %109 = tpu.matmul %107, %108, %cst_47 {dimension_numbers = #tpu.dot_dimension_numbers<[1], [0], [0], [1], [0, 0, 1, 1], [], []>} : vector<8x8xf32>, vector<8x32xf32>, vector<8x32xf32> -> vector<8x32xf32>
    %110 = arith.addf %90, %109 : vector<8x32xf32>
    %111 = vector.broadcast %18 : vector<1x32xf32> to vector<8x32xf32>
    %112 = arith.addf %110, %111 : vector<8x32xf32>
    %113 = arith.addf %1, %112 : vector<8x32xf32>
    %cst_48 = arith.constant dense<0.000000e+00> : vector<8xf32>
    %114 = vector.multi_reduction <add>, %113, %cst_48 [1] : vector<8x32xf32> to vector<8xf32>
    %115 = vector.shape_cast %114 : vector<8xf32> to vector<8x1xf32>
    %cst_49 = arith.constant 3.200000e+01 : f32
    %116 = vector.broadcast %cst_49 : f32 to vector<8x1xf32>
    %117 = arith.divf %115, %116 : vector<8x1xf32>
    %118 = vector.broadcast %117 : vector<8x1xf32> to vector<8x32xf32>
    %119 = arith.subf %113, %118 : vector<8x32xf32>
    %120 = arith.mulf %119, %119 : vector<8x32xf32>
    %cst_50 = arith.constant dense<0.000000e+00> : vector<8xf32>
    %121 = vector.multi_reduction <add>, %120, %cst_50 [1] : vector<8x32xf32> to vector<8xf32>
    %122 = vector.shape_cast %121 : vector<8xf32> to vector<8x1xf32>
    %cst_51 = arith.constant 3.200000e+01 : f32
    %123 = vector.broadcast %cst_51 : f32 to vector<8x1xf32>
    %124 = arith.divf %122, %123 : vector<8x1xf32>
    %125 = vector.broadcast %117 : vector<8x1xf32> to vector<8x32xf32>
    %126 = arith.subf %113, %125 : vector<8x32xf32>
    %cst_52 = arith.constant 9.99999974E-6 : f32
    %127 = vector.broadcast %cst_52 : f32 to vector<8x1xf32>
    %128 = arith.addf %124, %127 : vector<8x1xf32>
    %129 = math.rsqrt %128 : vector<8x1xf32>
    %130 = vector.broadcast %129 : vector<8x1xf32> to vector<8x32xf32>
    %131 = arith.mulf %126, %130 : vector<8x32xf32>
    %132 = vector.broadcast %21 : vector<1x32xf32> to vector<8x32xf32>
    %133 = arith.mulf %131, %132 : vector<8x32xf32>
    %134 = vector.broadcast %22 : vector<1x32xf32> to vector<8x32xf32>
    %135 = arith.addf %133, %134 : vector<8x32xf32>
    %cst_53 = arith.constant dense<0.000000e+00> : vector<8x64xf32>
    %136 = tpu.matmul %135, %11, %cst_53 {dimension_numbers = #tpu.dot_dimension_numbers<[1], [0], [0], [1], [0, 0, 1, 1], [], []>} : vector<8x32xf32>, vector<32x64xf32>, vector<8x64xf32> -> vector<8x64xf32>
    %137 = vector.broadcast %19 : vector<1x64xf32> to vector<8x64xf32>
    %138 = arith.addf %136, %137 : vector<8x64xf32>
    %cst_54 = arith.constant 0.000000e+00 : f32
    %139 = vector.broadcast %cst_54 : f32 to vector<8x64xf32>
    %140 = arith.maximumf %138, %139 : vector<8x64xf32>
    %cst_55 = arith.constant dense<0.000000e+00> : vector<8x32xf32>
    %141 = tpu.matmul %140, %13, %cst_55 {dimension_numbers = #tpu.dot_dimension_numbers<[1], [0], [0], [1], [0, 0, 1, 1], [], []>} : vector<8x64xf32>, vector<64x32xf32>, vector<8x32xf32> -> vector<8x32xf32>
    %142 = vector.broadcast %20 : vector<1x32xf32> to vector<8x32xf32>
    %143 = arith.addf %141, %142 : vector<8x32xf32>
    %144 = arith.addf %135, %143 : vector<8x32xf32>
    %cst_56 = arith.constant dense<0.000000e+00> : vector<8xf32>
    %145 = vector.multi_reduction <add>, %144, %cst_56 [1] : vector<8x32xf32> to vector<8xf32>
    %146 = vector.shape_cast %145 : vector<8xf32> to vector<8x1xf32>
    %cst_57 = arith.constant 3.200000e+01 : f32
    %147 = vector.broadcast %cst_57 : f32 to vector<8x1xf32>
    %148 = arith.divf %146, %147 : vector<8x1xf32>
    %149 = vector.broadcast %148 : vector<8x1xf32> to vector<8x32xf32>
    %150 = arith.subf %144, %149 : vector<8x32xf32>
    %151 = arith.mulf %150, %150 : vector<8x32xf32>
    %cst_58 = arith.constant dense<0.000000e+00> : vector<8xf32>
    %152 = vector.multi_reduction <add>, %151, %cst_58 [1] : vector<8x32xf32> to vector<8xf32>
    %153 = vector.shape_cast %152 : vector<8xf32> to vector<8x1xf32>
    %cst_59 = arith.constant 3.200000e+01 : f32
    %154 = vector.broadcast %cst_59 : f32 to vector<8x1xf32>
    %155 = arith.divf %153, %154 : vector<8x1xf32>
    %156 = vector.broadcast %148 : vector<8x1xf32> to vector<8x32xf32>
    %157 = arith.subf %144, %156 : vector<8x32xf32>
    %cst_60 = arith.constant 9.99999974E-6 : f32
    %158 = vector.broadcast %cst_60 : f32 to vector<8x1xf32>
    %159 = arith.addf %155, %158 : vector<8x1xf32>
    %160 = math.rsqrt %159 : vector<8x1xf32>
    %161 = vector.broadcast %160 : vector<8x1xf32> to vector<8x32xf32>
    %162 = arith.mulf %157, %161 : vector<8x32xf32>
    %163 = vector.broadcast %23 : vector<1x32xf32> to vector<8x32xf32>
    %164 = arith.mulf %162, %163 : vector<8x32xf32>
    %165 = vector.broadcast %24 : vector<1x32xf32> to vector<8x32xf32>
    %166 = arith.addf %164, %165 : vector<8x32xf32>
    %c0_61 = arith.constant 0 : index
    %c0_62 = arith.constant 0 : index
    %c0_63 = arith.constant 0 : index
    %c0_64 = arith.constant 0 : index
    %167 = vector.load %arg9[%c0_61, %c0_62, %c0_63, %c0_64] : memref<2x1x8x32xf32, #tpu.memory_space<vmem>>, vector<1x1x8x32xf32>
    %168 = vector.shape_cast %167 : vector<1x1x8x32xf32> to vector<8x32xf32>
    %169 = vector.shape_cast %166 : vector<8x32xf32> to vector<1x1x8x32xf32>
    tpu.vector_store %arg9[%c0_61, %c0_62, %c0_63, %c0_64], %169 {strides = array<i32>} : memref<2x1x8x32xf32, #tpu.memory_space<vmem>>, vector<1x1x8x32xf32>,
    %c1 = arith.constant 1 : index
    %c0_65 = arith.constant 0 : index
    %c0_66 = arith.constant 0 : index
    %170 = vector.load %arg3[%c1, %c0_65, %c0_66] : memref<2x32x64xf32, #tpu.memory_space<vmem>>, vector<1x32x64xf32>
    %171 = vector.shape_cast %170 : vector<1x32x64xf32> to vector<32x64xf32>
    %c1_67 = arith.constant 1 : index
    %c0_68 = arith.constant 0 : index
    %c0_69 = arith.constant 0 : index
    %172 = vector.load %arg4[%c1_67, %c0_68, %c0_69] : memref<2x32x32xf32, #tpu.memory_space<vmem>>, vector<1x32x32xf32>
    %173 = vector.shape_cast %172 : vector<1x32x32xf32> to vector<32x32xf32>
    %c1_70 = arith.constant 1 : index
    %c0_71 = arith.constant 0 : index
    %c0_72 = arith.constant 0 : index
    %174 = vector.load %arg5[%c1_70, %c0_71, %c0_72] : memref<2x32x32xf32, #tpu.memory_space<vmem>>, vector<1x32x32xf32>
    %175 = vector.shape_cast %174 : vector<1x32x32xf32> to vector<32x32xf32>
    %c1_73 = arith.constant 1 : index
    %c0_74 = arith.constant 0 : index
    %c0_75 = arith.constant 0 : index
    %176 = vector.load %arg6[%c1_73, %c0_74, %c0_75] : memref<2x32x64xf32, #tpu.memory_space<vmem>>, vector<1x32x64xf32>
    %177 = vector.shape_cast %176 : vector<1x32x64xf32> to vector<32x64xf32>
    %c1_76 = arith.constant 1 : index
    %c0_77 = arith.constant 0 : index
    %c0_78 = arith.constant 0 : index
    %178 = vector.load %arg7[%c1_76, %c0_77, %c0_78] : memref<2x64x32xf32, #tpu.memory_space<vmem>>, vector<1x64x32xf32>
    %179 = vector.shape_cast %178 : vector<1x64x32xf32> to vector<64x32xf32>
    %c1_79 = arith.constant 1 : index
    %c0_80 = arith.constant 0 : index
    %c0_81 = arith.constant 0 : index
    %180 = vector.load %arg8[%c1_79, %c0_80, %c0_81] : memref<2x9x64xf32, #tpu.memory_space<vmem>>, vector<1x9x64xf32>
    %181 = vector.shape_cast %180 : vector<1x9x64xf32> to vector<9x64xf32>
    %182 = vector.extract_strided_slice %181 {offsets = [0, 0], sizes = [1, 64], strides = [1, 1]} : vector<9x64xf32> to vector<1x64xf32>
    %183 = vector.extract_strided_slice %181 {offsets = [1, 0], sizes = [1, 32], strides = [1, 1]} : vector<9x64xf32> to vector<1x32xf32>
    %184 = vector.extract_strided_slice %181 {offsets = [2, 0], sizes = [1, 32], strides = [1, 1]} : vector<9x64xf32> to vector<1x32xf32>
    %185 = vector.extract_strided_slice %181 {offsets = [3, 0], sizes = [1, 64], strides = [1, 1]} : vector<9x64xf32> to vector<1x64xf32>
    %186 = vector.extract_strided_slice %181 {offsets = [4, 0], sizes = [1, 32], strides = [1, 1]} : vector<9x64xf32> to vector<1x32xf32>
    %187 = vector.extract_strided_slice %181 {offsets = [5, 0], sizes = [1, 32], strides = [1, 1]} : vector<9x64xf32> to vector<1x32xf32>
    %188 = vector.extract_strided_slice %181 {offsets = [6, 0], sizes = [1, 32], strides = [1, 1]} : vector<9x64xf32> to vector<1x32xf32>
    %189 = vector.extract_strided_slice %181 {offsets = [7, 0], sizes = [1, 32], strides = [1, 1]} : vector<9x64xf32> to vector<1x32xf32>
    %190 = vector.extract_strided_slice %181 {offsets = [8, 0], sizes = [1, 32], strides = [1, 1]} : vector<9x64xf32> to vector<1x32xf32>
    %191 = arith.addf %166, %3 : vector<8x32xf32>
    %cst_82 = arith.constant dense<0.000000e+00> : vector<8x64xf32>
    %192 = tpu.matmul %191, %171, %cst_82 {dimension_numbers = #tpu.dot_dimension_numbers<[1], [0], [0], [1], [0, 0, 1, 1], [], []>} : vector<8x32xf32>, vector<32x64xf32>, vector<8x64xf32> -> vector<8x64xf32>
    %193 = vector.broadcast %182 : vector<1x64xf32> to vector<8x64xf32>
    %194 = arith.addf %192, %193 : vector<8x64xf32>
    %cst_83 = arith.constant dense<0.000000e+00> : vector<8x32xf32>
    %195 = tpu.matmul %166, %173, %cst_83 {dimension_numbers = #tpu.dot_dimension_numbers<[1], [0], [0], [1], [0, 0, 1, 1], [], []>} : vector<8x32xf32>, vector<32x32xf32>, vector<8x32xf32> -> vector<8x32xf32>
    %196 = vector.broadcast %183 : vector<1x32xf32> to vector<8x32xf32>
    %197 = arith.addf %195, %196 : vector<8x32xf32>
    %198 = vector.extract_strided_slice %194 {offsets = [0, 0], sizes = [8, 8], strides = [1, 1]} : vector<8x64xf32> to vector<8x8xf32>
    %199 = vector.extract_strided_slice %194 {offsets = [0, 32], sizes = [8, 8], strides = [1, 1]} : vector<8x64xf32> to vector<8x8xf32>
    %200 = vector.extract_strided_slice %197 {offsets = [0, 0], sizes = [8, 8], strides = [1, 1]} : vector<8x32xf32> to vector<8x8xf32>
    "tpu.trace_start"() <{level = 10 : i32, message = "qd,kd->qk"}> : () -> ()
    %cst_84 = arith.constant dense<0.000000e+00> : vector<8x8xf32>
    %201 = tpu.matmul %198, %199, %cst_84 {dimension_numbers = #tpu.dot_dimension_numbers<[1], [1], [0], [0], [0, 0, 1, 0], [], []>} : vector<8x8xf32>, vector<8x8xf32>, vector<8x8xf32> -> vector<8x8xf32>
    "tpu.trace_stop"() : () -> ()
    %cst_85 = arith.constant 0.353553385 : f32
    %202 = vector.broadcast %cst_85 : f32 to vector<8x8xf32>
    %203 = arith.mulf %201, %202 : vector<8x8xf32>
    %cst_86 = arith.constant dense<0xFF800000> : vector<8xf32>
    %204 = vector.multi_reduction <maximumf>, %203, %cst_86 [1] : vector<8x8xf32> to vector<8xf32>
    %205 = vector.shape_cast %204 : vector<8xf32> to vector<8x1xf32>
    %206 = vector.broadcast %205 : vector<8x1xf32> to vector<8x8xf32>
    %207 = arith.subf %203, %206 : vector<8x8xf32>
    %208 = math.exp %207 : vector<8x8xf32>
    %cst_87 = arith.constant dense<0.000000e+00> : vector<8xf32>
    %209 = vector.multi_reduction <add>, %208, %cst_87 [1] : vector<8x8xf32> to vector<8xf32>
    %210 = vector.shape_cast %209 : vector<8xf32> to vector<8x1xf32>
    %211 = tpu.reciprocal %210 {approx = true} : vector<8x1xf32> -> vector<8x1xf32>
    %212 = vector.broadcast %211 : vector<8x1xf32> to vector<8x8xf32>
    %213 = arith.mulf %208, %212 : vector<8x8xf32>
    %cst_88 = arith.constant dense<0.000000e+00> : vector<8x8xf32>
    %214 = tpu.matmul %213, %200, %cst_88 {dimension_numbers = #tpu.dot_dimension_numbers<[1], [0], [0], [1], [0, 0, 1, 1], [], []>} : vector<8x8xf32>, vector<8x8xf32>, vector<8x8xf32> -> vector<8x8xf32>
    %215 = vector.extract_strided_slice %175 {offsets = [0, 0], sizes = [8, 32], strides = [1, 1]} : vector<32x32xf32> to vector<8x32xf32>
    %cst_89 = arith.constant dense<0.000000e+00> : vector<8x32xf32>
    %216 = tpu.matmul %214, %215, %cst_89 {dimension_numbers = #tpu.dot_dimension_numbers<[1], [0], [0], [1], [0, 0, 1, 1], [], []>} : vector<8x8xf32>, vector<8x32xf32>, vector<8x32xf32> -> vector<8x32xf32>
    %217 = vector.extract_strided_slice %194 {offsets = [0, 8], sizes = [8, 8], strides = [1, 1]} : vector<8x64xf32> to vector<8x8xf32>
    %218 = vector.extract_strided_slice %194 {offsets = [0, 40], sizes = [8, 8], strides = [1, 1]} : vector<8x64xf32> to vector<8x8xf32>
    %219 = vector.extract_strided_slice %197 {offsets = [0, 8], sizes = [8, 8], strides = [1, 1]} : vector<8x32xf32> to vector<8x8xf32>
    "tpu.trace_start"() <{level = 10 : i32, message = "qd,kd->qk"}> : () -> ()
    %cst_90 = arith.constant dense<0.000000e+00> : vector<8x8xf32>
    %220 = tpu.matmul %217, %218, %cst_90 {dimension_numbers = #tpu.dot_dimension_numbers<[1], [1], [0], [0], [0, 0, 1, 0], [], []>} : vector<8x8xf32>, vector<8x8xf32>, vector<8x8xf32> -> vector<8x8xf32>
    "tpu.trace_stop"() : () -> ()
    %cst_91 = arith.constant 0.353553385 : f32
    %221 = vector.broadcast %cst_91 : f32 to vector<8x8xf32>
    %222 = arith.mulf %220, %221 : vector<8x8xf32>
    %cst_92 = arith.constant dense<0xFF800000> : vector<8xf32>
    %223 = vector.multi_reduction <maximumf>, %222, %cst_92 [1] : vector<8x8xf32> to vector<8xf32>
    %224 = vector.shape_cast %223 : vector<8xf32> to vector<8x1xf32>
    %225 = vector.broadcast %224 : vector<8x1xf32> to vector<8x8xf32>
    %226 = arith.subf %222, %225 : vector<8x8xf32>
    %227 = math.exp %226 : vector<8x8xf32>
    %cst_93 = arith.constant dense<0.000000e+00> : vector<8xf32>
    %228 = vector.multi_reduction <add>, %227, %cst_93 [1] : vector<8x8xf32> to vector<8xf32>
    %229 = vector.shape_cast %228 : vector<8xf32> to vector<8x1xf32>
    %230 = tpu.reciprocal %229 {approx = true} : vector<8x1xf32> -> vector<8x1xf32>
    %231 = vector.broadcast %230 : vector<8x1xf32> to vector<8x8xf32>
    %232 = arith.mulf %227, %231 : vector<8x8xf32>
    %cst_94 = arith.constant dense<0.000000e+00> : vector<8x8xf32>
    %233 = tpu.matmul %232, %219, %cst_94 {dimension_numbers = #tpu.dot_dimension_numbers<[1], [0], [0], [1], [0, 0, 1, 1], [], []>} : vector<8x8xf32>, vector<8x8xf32>, vector<8x8xf32> -> vector<8x8xf32>
    %234 = vector.extract_strided_slice %175 {offsets = [8, 0], sizes = [8, 32], strides = [1, 1]} : vector<32x32xf32> to vector<8x32xf32>
    %cst_95 = arith.constant dense<0.000000e+00> : vector<8x32xf32>
    %235 = tpu.matmul %233, %234, %cst_95 {dimension_numbers = #tpu.dot_dimension_numbers<[1], [0], [0], [1], [0, 0, 1, 1], [], []>} : vector<8x8xf32>, vector<8x32xf32>, vector<8x32xf32> -> vector<8x32xf32>
    %236 = arith.addf %216, %235 : vector<8x32xf32>
    %237 = vector.extract_strided_slice %194 {offsets = [0, 16], sizes = [8, 8], strides = [1, 1]} : vector<8x64xf32> to vector<8x8xf32>
    %238 = vector.extract_strided_slice %194 {offsets = [0, 48], sizes = [8, 8], strides = [1, 1]} : vector<8x64xf32> to vector<8x8xf32>
    %239 = vector.extract_strided_slice %197 {offsets = [0, 16], sizes = [8, 8], strides = [1, 1]} : vector<8x32xf32> to vector<8x8xf32>
    "tpu.trace_start"() <{level = 10 : i32, message = "qd,kd->qk"}> : () -> ()
    %cst_96 = arith.constant dense<0.000000e+00> : vector<8x8xf32>
    %240 = tpu.matmul %237, %238, %cst_96 {dimension_numbers = #tpu.dot_dimension_numbers<[1], [1], [0], [0], [0, 0, 1, 0], [], []>} : vector<8x8xf32>, vector<8x8xf32>, vector<8x8xf32> -> vector<8x8xf32>
    "tpu.trace_stop"() : () -> ()
    %cst_97 = arith.constant 0.353553385 : f32
    %241 = vector.broadcast %cst_97 : f32 to vector<8x8xf32>
    %242 = arith.mulf %240, %241 : vector<8x8xf32>
    %cst_98 = arith.constant dense<0xFF800000> : vector<8xf32>
    %243 = vector.multi_reduction <maximumf>, %242, %cst_98 [1] : vector<8x8xf32> to vector<8xf32>
    %244 = vector.shape_cast %243 : vector<8xf32> to vector<8x1xf32>
    %245 = vector.broadcast %244 : vector<8x1xf32> to vector<8x8xf32>
    %246 = arith.subf %242, %245 : vector<8x8xf32>
    %247 = math.exp %246 : vector<8x8xf32>
    %cst_99 = arith.constant dense<0.000000e+00> : vector<8xf32>
    %248 = vector.multi_reduction <add>, %247, %cst_99 [1] : vector<8x8xf32> to vector<8xf32>
    %249 = vector.shape_cast %248 : vector<8xf32> to vector<8x1xf32>
    %250 = tpu.reciprocal %249 {approx = true} : vector<8x1xf32> -> vector<8x1xf32>
    %251 = vector.broadcast %250 : vector<8x1xf32> to vector<8x8xf32>
    %252 = arith.mulf %247, %251 : vector<8x8xf32>
    %cst_100 = arith.constant dense<0.000000e+00> : vector<8x8xf32>
    %253 = tpu.matmul %252, %239, %cst_100 {dimension_numbers = #tpu.dot_dimension_numbers<[1], [0], [0], [1], [0, 0, 1, 1], [], []>} : vector<8x8xf32>, vector<8x8xf32>, vector<8x8xf32> -> vector<8x8xf32>
    %254 = vector.extract_strided_slice %175 {offsets = [16, 0], sizes = [8, 32], strides = [1, 1]} : vector<32x32xf32> to vector<8x32xf32>
    %cst_101 = arith.constant dense<0.000000e+00> : vector<8x32xf32>
    %255 = tpu.matmul %253, %254, %cst_101 {dimension_numbers = #tpu.dot_dimension_numbers<[1], [0], [0], [1], [0, 0, 1, 1], [], []>} : vector<8x8xf32>, vector<8x32xf32>, vector<8x32xf32> -> vector<8x32xf32>
    %256 = arith.addf %236, %255 : vector<8x32xf32>
    %257 = vector.extract_strided_slice %194 {offsets = [0, 24], sizes = [8, 8], strides = [1, 1]} : vector<8x64xf32> to vector<8x8xf32>
    %258 = vector.extract_strided_slice %194 {offsets = [0, 56], sizes = [8, 8], strides = [1, 1]} : vector<8x64xf32> to vector<8x8xf32>
    %259 = vector.extract_strided_slice %197 {offsets = [0, 24], sizes = [8, 8], strides = [1, 1]} : vector<8x32xf32> to vector<8x8xf32>
    "tpu.trace_start"() <{level = 10 : i32, message = "qd,kd->qk"}> : () -> ()
    %cst_102 = arith.constant dense<0.000000e+00> : vector<8x8xf32>
    %260 = tpu.matmul %257, %258, %cst_102 {dimension_numbers = #tpu.dot_dimension_numbers<[1], [1], [0], [0], [0, 0, 1, 0], [], []>} : vector<8x8xf32>, vector<8x8xf32>, vector<8x8xf32> -> vector<8x8xf32>
    "tpu.trace_stop"() : () -> ()
    %cst_103 = arith.constant 0.353553385 : f32
    %261 = vector.broadcast %cst_103 : f32 to vector<8x8xf32>
    %262 = arith.mulf %260, %261 : vector<8x8xf32>
    %cst_104 = arith.constant dense<0xFF800000> : vector<8xf32>
    %263 = vector.multi_reduction <maximumf>, %262, %cst_104 [1] : vector<8x8xf32> to vector<8xf32>
    %264 = vector.shape_cast %263 : vector<8xf32> to vector<8x1xf32>
    %265 = vector.broadcast %264 : vector<8x1xf32> to vector<8x8xf32>
    %266 = arith.subf %262, %265 : vector<8x8xf32>
    %267 = math.exp %266 : vector<8x8xf32>
    %cst_105 = arith.constant dense<0.000000e+00> : vector<8xf32>
    %268 = vector.multi_reduction <add>, %267, %cst_105 [1] : vector<8x8xf32> to vector<8xf32>
    %269 = vector.shape_cast %268 : vector<8xf32> to vector<8x1xf32>
    %270 = tpu.reciprocal %269 {approx = true} : vector<8x1xf32> -> vector<8x1xf32>
    %271 = vector.broadcast %270 : vector<8x1xf32> to vector<8x8xf32>
    %272 = arith.mulf %267, %271 : vector<8x8xf32>
    %cst_106 = arith.constant dense<0.000000e+00> : vector<8x8xf32>
    %273 = tpu.matmul %272, %259, %cst_106 {dimension_numbers = #tpu.dot_dimension_numbers<[1], [0], [0], [1], [0, 0, 1, 1], [], []>} : vector<8x8xf32>, vector<8x8xf32>, vector<8x8xf32> -> vector<8x8xf32>
    %274 = vector.extract_strided_slice %175 {offsets = [24, 0], sizes = [8, 32], strides = [1, 1]} : vector<32x32xf32> to vector<8x32xf32>
    %cst_107 = arith.constant dense<0.000000e+00> : vector<8x32xf32>
    %275 = tpu.matmul %273, %274, %cst_107 {dimension_numbers = #tpu.dot_dimension_numbers<[1], [0], [0], [1], [0, 0, 1, 1], [], []>} : vector<8x8xf32>, vector<8x32xf32>, vector<8x32xf32> -> vector<8x32xf32>
    %276 = arith.addf %256, %275 : vector<8x32xf32>
    %277 = vector.broadcast %184 : vector<1x32xf32> to vector<8x32xf32>
    %278 = arith.addf %276, %277 : vector<8x32xf32>
    %279 = arith.addf %166, %278 : vector<8x32xf32>
    %cst_108 = arith.constant dense<0.000000e+00> : vector<8xf32>
    %280 = vector.multi_reduction <add>, %279, %cst_108 [1] : vector<8x32xf32> to vector<8xf32>
    %281 = vector.shape_cast %280 : vector<8xf32> to vector<8x1xf32>
    %cst_109 = arith.constant 3.200000e+01 : f32
    %282 = vector.broadcast %cst_109 : f32 to vector<8x1xf32>
    %283 = arith.divf %281, %282 : vector<8x1xf32>
    %284 = vector.broadcast %283 : vector<8x1xf32> to vector<8x32xf32>
    %285 = arith.subf %279, %284 : vector<8x32xf32>
    %286 = arith.mulf %285, %285 : vector<8x32xf32>
    %cst_110 = arith.constant dense<0.000000e+00> : vector<8xf32>
    %287 = vector.multi_reduction <add>, %286, %cst_110 [1] : vector<8x32xf32> to vector<8xf32>
    %288 = vector.shape_cast %287 : vector<8xf32> to vector<8x1xf32>
    %cst_111 = arith.constant 3.200000e+01 : f32
    %289 = vector.broadcast %cst_111 : f32 to vector<8x1xf32>
    %290 = arith.divf %288, %289 : vector<8x1xf32>
    %291 = vector.broadcast %283 : vector<8x1xf32> to vector<8x32xf32>
    %292 = arith.subf %279, %291 : vector<8x32xf32>
    %cst_112 = arith.constant 9.99999974E-6 : f32
    %293 = vector.broadcast %cst_112 : f32 to vector<8x1xf32>
    %294 = arith.addf %290, %293 : vector<8x1xf32>
    %295 = math.rsqrt %294 : vector<8x1xf32>
    %296 = vector.broadcast %295 : vector<8x1xf32> to vector<8x32xf32>
    %297 = arith.mulf %292, %296 : vector<8x32xf32>
    %298 = vector.broadcast %187 : vector<1x32xf32> to vector<8x32xf32>
    %299 = arith.mulf %297, %298 : vector<8x32xf32>
    %300 = vector.broadcast %188 : vector<1x32xf32> to vector<8x32xf32>
    %301 = arith.addf %299, %300 : vector<8x32xf32>
    %cst_113 = arith.constant dense<0.000000e+00> : vector<8x64xf32>
    %302 = tpu.matmul %301, %177, %cst_113 {dimension_numbers = #tpu.dot_dimension_numbers<[1], [0], [0], [1], [0, 0, 1, 1], [], []>} : vector<8x32xf32>, vector<32x64xf32>, vector<8x64xf32> -> vector<8x64xf32>
    %303 = vector.broadcast %185 : vector<1x64xf32> to vector<8x64xf32>
    %304 = arith.addf %302, %303 : vector<8x64xf32>
    %cst_114 = arith.constant 0.000000e+00 : f32
    %305 = vector.broadcast %cst_114 : f32 to vector<8x64xf32>
    %306 = arith.maximumf %304, %305 : vector<8x64xf32>
    %cst_115 = arith.constant dense<0.000000e+00> : vector<8x32xf32>
    %307 = tpu.matmul %306, %179, %cst_115 {dimension_numbers = #tpu.dot_dimension_numbers<[1], [0], [0], [1], [0, 0, 1, 1], [], []>} : vector<8x64xf32>, vector<64x32xf32>, vector<8x32xf32> -> vector<8x32xf32>
    %308 = vector.broadcast %186 : vector<1x32xf32> to vector<8x32xf32>
    %309 = arith.addf %307, %308 : vector<8x32xf32>
    %310 = arith.addf %301, %309 : vector<8x32xf32>
    %cst_116 = arith.constant dense<0.000000e+00> : vector<8xf32>
    %311 = vector.multi_reduction <add>, %310, %cst_116 [1] : vector<8x32xf32> to vector<8xf32>
    %312 = vector.shape_cast %311 : vector<8xf32> to vector<8x1xf32>
    %cst_117 = arith.constant 3.200000e+01 : f32
    %313 = vector.broadcast %cst_117 : f32 to vector<8x1xf32>
    %314 = arith.divf %312, %313 : vector<8x1xf32>
    %315 = vector.broadcast %314 : vector<8x1xf32> to vector<8x32xf32>
    %316 = arith.subf %310, %315 : vector<8x32xf32>
    %317 = arith.mulf %316, %316 : vector<8x32xf32>
    %cst_118 = arith.constant dense<0.000000e+00> : vector<8xf32>
    %318 = vector.multi_reduction <add>, %317, %cst_118 [1] : vector<8x32xf32> to vector<8xf32>
    %319 = vector.shape_cast %318 : vector<8xf32> to vector<8x1xf32>
    %cst_119 = arith.constant 3.200000e+01 : f32
    %320 = vector.broadcast %cst_119 : f32 to vector<8x1xf32>
    %321 = arith.divf %319, %320 : vector<8x1xf32>
    %322 = vector.broadcast %314 : vector<8x1xf32> to vector<8x32xf32>
    %323 = arith.subf %310, %322 : vector<8x32xf32>
    %cst_120 = arith.constant 9.99999974E-6 : f32
    %324 = vector.broadcast %cst_120 : f32 to vector<8x1xf32>
    %325 = arith.addf %321, %324 : vector<8x1xf32>
    %326 = math.rsqrt %325 : vector<8x1xf32>
    %327 = vector.broadcast %326 : vector<8x1xf32> to vector<8x32xf32>
    %328 = arith.mulf %323, %327 : vector<8x32xf32>
    %329 = vector.broadcast %189 : vector<1x32xf32> to vector<8x32xf32>
    %330 = arith.mulf %328, %329 : vector<8x32xf32>
    %331 = vector.broadcast %190 : vector<1x32xf32> to vector<8x32xf32>
    %332 = arith.addf %330, %331 : vector<8x32xf32>
    %c1_121 = arith.constant 1 : index
    %c0_122 = arith.constant 0 : index
    %c0_123 = arith.constant 0 : index
    %c0_124 = arith.constant 0 : index
    %333 = vector.load %arg9[%c1_121, %c0_122, %c0_123, %c0_124] : memref<2x1x8x32xf32, #tpu.memory_space<vmem>>, vector<1x1x8x32xf32>
    %334 = vector.shape_cast %333 : vector<1x1x8x32xf32> to vector<8x32xf32>
    %335 = vector.shape_cast %332 : vector<8x32xf32> to vector<1x1x8x32xf32>
    tpu.vector_store %arg9[%c1_121, %c0_122, %c0_123, %c0_124], %335 {strides = array<i32>} : memref<2x1x8x32xf32, #tpu.memory_space<vmem>>, vector<1x1x8x32xf32>,
    return
  }
  func.func @transform_0(%arg0: i32) -> (i32, i32, i32) {
    %c0_i32 = arith.constant 0 : i32
    %c0_i32_0 = arith.constant 0 : i32
    %c0_i32_1 = arith.constant 0 : i32
    return %arg0, %c0_i32, %c0_i32_0 : i32, i32, i32
  }
  func.func @transform_1(%arg0: i32) -> (i32, i32, i32) {
    %c0_i32 = arith.constant 0 : i32
    %c0_i32_0 = arith.constant 0 : i32
    %c0_i32_1 = arith.constant 0 : i32
    return %arg0, %c0_i32, %c0_i32_0 : i32, i32, i32
  }
  func.func @transform_2(%arg0: i32) -> (i32, i32, i32) {
    %c0_i32 = arith.constant 0 : i32
    %c0_i32_0 = arith.constant 0 : i32
    %c0_i32_1 = arith.constant 0 : i32
    %c0_i32_2 = arith.constant 0 : i32
    return %c0_i32, %c0_i32_0, %c0_i32_1 : i32, i32, i32
  }
  func.func @transform_3(%arg0: i32) -> (i32, i32, i32) {
    %c0_i32 = arith.constant 0 : i32
    %c0_i32_0 = arith.constant 0 : i32
    %c0_i32_1 = arith.constant 0 : i32
    %c0_i32_2 = arith.constant 0 : i32
    return %c0_i32, %c0_i32_0, %c0_i32_1 : i32, i32, i32
  }
  func.func @transform_4(%arg0: i32) -> (i32, i32, i32) {
    %c0_i32 = arith.constant 0 : i32
    %c0_i32_0 = arith.constant 0 : i32
    %c0_i32_1 = arith.constant 0 : i32
    %c0_i32_2 = arith.constant 0 : i32
    return %c0_i32, %c0_i32_0, %c0_i32_1 : i32, i32, i32
  }
  func.func @transform_5(%arg0: i32) -> (i32, i32, i32) {
    %c0_i32 = arith.constant 0 : i32
    %c0_i32_0 = arith.constant 0 : i32
    %c0_i32_1 = arith.constant 0 : i32
    %c0_i32_2 = arith.constant 0 : i32
    return %c0_i32, %c0_i32_0, %c0_i32_1 : i32, i32, i32
  }
  func.func @transform_6(%arg0: i32) -> (i32, i32, i32) {
    %c0_i32 = arith.constant 0 : i32
    %c0_i32_0 = arith.constant 0 : i32
    %c0_i32_1 = arith.constant 0 : i32
    %c0_i32_2 = arith.constant 0 : i32
    return %c0_i32, %c0_i32_0, %c0_i32_1 : i32, i32, i32
  }
  func.func @transform_7(%arg0: i32) -> (i32, i32, i32) {
    %c0_i32 = arith.constant 0 : i32
    %c0_i32_0 = arith.constant 0 : i32
    %c0_i32_1 = arith.constant 0 : i32
    %c0_i32_2 = arith.constant 0 : i32
    return %c0_i32, %c0_i32_0, %c0_i32_1 : i32, i32, i32
  }
  func.func @transform_8(%arg0: i32) -> (i32, i32, i32, i32) {
    %c0_i32 = arith.constant 0 : i32
    %c0_i32_0 = arith.constant 0 : i32
    %c0_i32_1 = arith.constant 0 : i32
    %c0_i32_2 = arith.constant 0 : i32
    return %c0_i32, %arg0, %c0_i32_0, %c0_i32_1 : i32, i32, i32, i32
  }
}

</mosaic_0001>

<bundles_post_ra>
// kernel: transformer_encoder_forward.1
= control target key start
LH: loop header
LB: loop body
LE: loop exit
PB: predicated region body
PF: predicated region fallthrough
CT: control target
= control target key end

     0   :  { %s3677_s27 = smov 0   ;;  %s3679_s28 = smov 0   ;;  %s4216_s0 = inlined_call_operand.vmem [shape: f32[2,8,32], index: 0, kind: input, shape index: {}]   ;;  %s4217_s1 = inlined_call_operand.vmem [shape: f32[2,8,32], index: 1, kind: input, shape index: {}]   ;;  %s4218_s2 = inlined_call_operand.vmem [shape: f32[2,32,64], index: 2, kind: input, shape index: {}]   ;;  %s4219_s3 = inlined_call_operand.vmem [shape: f32[2,32,32], index: 3, kind: input, shape index: {}]   ;;  %s4220_s4 = inlined_call_operand.vmem [shape: f32[2,32,32], index: 4, kind: input, shape index: {}]   ;;  %s4221_s5 = inlined_call_operand.vmem [shape: f32[2,32,64], index: 5, kind: input, shape index: {}]   ;;  %s4222_s6 = inlined_call_operand.vmem [shape: f32[2,64,32], index: 6, kind: input, shape index: {}]   ;;  %s4223_s7 = inlined_call_operand.vmem [shape: f32[2,9,64], index: 7, kind: input, shape index: {}]   ;;  %s4224_s8 = inlined_call_operand.vmem [shape: f32[2,2,8,32], index: 8, kind: output, shape index: {}]  }
   0x1   :  { %s3681_s29 = smov 0  }
   0x2 LB: > { %s3690_s30 = sadd.s32 4294967295, %s3621_s29   ;;  %s3692_s9 = sadd.s32 1, %s3621_s29   ;;  %s3621_s29 = sphi %s3681_s29, %s4228_s29   ;;  %s3617_s28 = sphi %s3679_s28, %s4227_s28   ;;  %s3613_s27 = sphi %s3677_s27, %s4226_s27  }
   0x3   : > { %s200_s10 = ssub.s32 %s3621_s29, %s3692_s9  ;;  %s203_s11 = sadd.s32 1, %s3617_s28 }
   0x4   : > { %p201_p0 = scmp.eq.s32.totalorder %s200_s10, 0  ;;  %p213_p1 = scmp.ne.s32.totalorder %s3617_s28, %s3613_s27 }
   0x5   : > { %p214_p2 = scmp.eq.s32.totalorder %s3690_s30, 1  ;;  %p3129_p3 = scmp.ge.s32.totalorder %s3621_s29, 1 }
   0x6   : > { %s3700_s12 = scalar_select %p201_p0, %s3617_s28, %s203_s11  }
   0x7   : > { %p3702_p4 = por %p214_p2, %p213_p1  ;;  %p270_p5 = scmp.lt.s32.totalorder %s3621_s29, 3 }
   0x9   : > { %p271_p6 = pnand %p3129_p3, %p270_p5 }
   0xa   : > { %p306_p7 = scmp.lt.s32.totalorder (!%p271_p6), %s3690_s30, 1  ;;  %s3625_s16 = smov (!%p271_p6), 88  }
   0xb   : > { %274 = sbr.rel (%p271_p6) target bundleno = 7426 (0x1d02), region = 52  ;;  %s3626_s17 = smov (!%p271_p6), 96  }
   0xc   : > { %s3628_s29 = smov (!%p271_p6), 112   ;;  %s3629_s10 = smov (!%p271_p6), 80  }
   0xd   : > { %s3630_s19 = smov (!%p271_p6), 104   ;;  %s3631_s20 = smov (!%p271_p6), 72  }
  0x10   : > { %v319_v0 = vld [vmem:[%s4218_s2 + $0x18] sm:$0xff]  ;;  %v3623_v1 = vmov 0.0   ;;  %v318_v2 = vld [vmem:[%s4218_s2 + $0x10] sm:$0xff]  ;;  %vm3624_vm0 = vmmov 0   ;;  %s307_s18 = scalar_select %p306_p7, %s3690_s30, 1  ;;  %v317_v3 = vld [vmem:[%s4218_s2 + $0x8] sm:$0xff]  ;;  %v343_v8 = vlaneseq }
  0x11   : > { %3302 = vmatprep.subr.mxu0 %v3623_v1  ;;  %3310 = vmatprep.mubr.msk.f32.mxu0 %vm3624_vm0, %v3623_v1  ;;  %v316_v4 = vld [vmem:[%s4218_s2] sm:$0xff]  ;;  %vm347_vm1 = vcmask 261120   ;;  %vm501_vm2 = vcmask 64512   ;;  %v323_v17 = vld [vmem:[%s4219_s3 + $0x18] sm:$0xff]  ;;  %v322_v18 = vld [vmem:[%s4219_s3 + $0x10] sm:$0xff]  ;;  %vm1566_vm3 = vcmask 523264  }
  0x12   : > { %3303 = vmatpush3.msra.mxu0 %v319_v0  ;;  %3313 = vmatprep.subr.mxu1 %v3623_v1  ;;  %s3131_s21 = sshll.u32 %s307_s18, 3  ;;  %v3745_v9 = vshrl.u32 %v343_v8, 7  ;;  %v3751_v11 = vld [vmem:[%s4223_s7] sm:$0xff]  ;;  %v321_v19 = vld [vmem:[%s4219_s3 + $0x8] sm:$0xff] }
  0x13   : > { %3304 = vmatprep.subr.mxu0 %v3623_v1  ;;  %3321 = vmatprep.mubr.msk.f32.mxu1 %vm3624_vm0, %v3623_v1  ;;  %s309_s26 = scalar_lea.vmem %s4216_s0, %s3131_s21  ;;  %s313_s11 = scalar_lea.vmem %s4217_s1, %s3131_s21  ;;  %v320_v20 = vld [vmem:[%s4219_s3] sm:$0xff]  ;;  %v325_v51 = vld [vmem:[%s4220_s4 + $0x8] sm:$0xff] }
  0x14   : > { %3305 = vmatpush3.msra.mxu0 %v318_v2  ;;  %v3734_v5 = vld [vmem:[%s309_s26] sm:$0xff]  ;;  %v345_v10 = vsub.s32 0, %v3745_v9  ;;  %3314 = vmatpush3.msra.mxu1 %v323_v17  ;;  %v423_v30 = vsub.s32 1, %v3745_v9  ;;  %s3627_s26 = smov 120   ;;  %s303_s21 = sand.u32 1, %s3613_s27  }
  0x15   : > { %3306 = vmatprep.subr.mxu0 %v3623_v1  ;;  %v3736_v6 = vld [vmem:[%s313_s11] sm:$0xff]  ;;  %3315 = vmatprep.subr.mxu1 %v3623_v1  ;;  %s3130_s22 = sshll.u32 %s303_s21, 4 }
  0x16   : > { %3307 = vmatpush3.msra.mxu0 %v317_v3  ;;  %v342_v7 = vadd.f32 %v3736_v6, %v3734_v5  ;;  %v346_v12 = vrot.slane %v3751_v11, %v345_v10  ;;  %3316 = vmatpush3.msra.mxu1 %v322_v18  ;;  %v424_v32 = vrot.slane %v3751_v11, %v423_v30  ;;  %v324_v56 = vld [vmem:[%s4220_s4] sm:$0xff]  ;;  %s3988_s27 = scalar_lea.vmem [#allocation2], %s3130_s22 }
  0x17   : > { %3308 = vmatprep.subr.mxu0 %v3623_v1  ;;  %3317 = vmatprep.subr.mxu1 %v3623_v1 }
  0x18   : > { %3309 = vmatpush3.msra.mxu0 %v316_v4  ;;  %3318 = vmatpush3.msra.mxu1 %v321_v19 }
  0x19   : > { %3311 = vmatmul.mubr.msk.f32.vlgmr.msra.gmra.mxu0 %vm347_vm1, %v342_v7  ;;  %3324 = vmatprep.subr.mxu0 %v3623_v1 }
  0x1a   : > { %3326 = vmatprep.mubr.msk.f32.mxu0 %vm3624_vm0, %v3623_v1  ;;  %3319 = vmatprep.subr.mxu1 %v3623_v1 }
  0x1b   : > { %3320 = vmatpush3.msra.mxu1 %v320_v20 }
  0x1c   : > { %3322 = vmatmul.mubr.msk.f32.vlgmr.msra.gmra.mxu1 %vm347_vm1, %v3734_v5  ;;  %3339 = vmatprep.subr.mxu1 %v3623_v1 }
  0x1d   : > { %3341 = vmatprep.mubr.msk.f32.mxu1 %vm3624_vm0, %v3623_v1 }
  0xd9   : > { %v417_v13 = vpop.f32.mrf.mxu0 }
  0xda   : > { %v3756_v14 = vadd.f32 %v417_v13, %v346_v12 }
  0xdb   : > { %v3312_v15 = vpop.f32.mrf.mxu0 }
  0xdc   : > { %663 = vrot.lane.b32.xlu1 %v3756_v14, %s3625_s16  ;;  %499 = vrot.lane.b32.xlu0 %v3756_v14, %s3626_s17  ;;  %v494_v31 = vpop.f32.mrf.mxu1 }
  0xdd   : > { %v3796_v34 = vadd.f32 %v494_v31, %v424_v32 }
  0xde   : > { %v3323_v33 = vpop.f32.mrf.mxu1 }
 0x14e   : > { %v500_v16 = vpop.permute.xlu0 %499  ;;  %v664_v35 = vpop.permute.xlu1 %663 }
 0x14f   : > { %3325 = vmatpush3.xpose.msk.msra.mxu0 %vm501_vm2, %v500_v16 }
 0x150   : > { %3329 = vmatprep.subr.mxu0 %v3623_v1 }
 0x152   : > { %3327 = vmatmul.mubr.msk.f32.vlgmr.msra.gmra.mxu0 %vm501_vm2, %v3756_v14 }
 0x153   : > { %3331 = vmatprep.mubr.msk.f32.mxu0 %vm3624_vm0, %v3623_v1  ;;  %3330 = vmatpush3.msra.mxu0 %v3796_v34 }
 0x154   : > { %3334 = vmatprep.subr.mxu0 %v3623_v1 }
 0x212   : > { %v572_v21 = vpop.f32.mrf.mxu0 }
 0x213   : > { %v576_v22 = vmul.f32 0.35355338, %v572_v21 }
 0x214   : > { %v3328_v23 = vpop.f32.mrf.mxu0 }
 0x215   : > { %v577_v24 = vsel %vm501_vm2, %v576_v22, -inf }
 0x216   : > { %578 = vmax.xlane.f32.xlu0 %v577_v24 }
 0x29f   : > { %v579_v25 = vpop.xlane.xlu0 %578 }
 0x2a0   : > { %v580_v26 = vsub.f32 %v576_v22, %v579_v25 }
 0x2a2   : > { %v581_v27 = vmul.f32 1.442695, %v580_v26 }
 0x2a4   : > { %3559 = vpow2.f32 %v581_v27 }
 0x2b1   : > { %v3560_v28 = vpop.eup %3559 }
 0x2b2   : > { %v583_v29 = vsel %vm501_vm2, %v3560_v28, 0.0 }
 0x2b3   : > { %584 = vadd.xlane.f32.xlu1 %v583_v29 }
 0x2c4   : > { %661 = vrot.lane.b32.xlu1 %v3756_v14, %s3627_s26 }
 0x33c   : > { %v585_v36 = vpop.xlane.xlu1 %584 }
 0x33d   : > { %3561 = vrcp.f32 %v585_v36 }
 0x340   : > { %v662_v39 = vpop.permute.xlu1 %661 }
 0x34a   : > { %v3562_v37 = vpop.eup %3561 }
 0x34b   : > { %v587_v38 = vmul.f32 %v3562_v37, %v3560_v28  ;;  %v327_v37 = vld [vmem:[%s4220_s4 + $0x18] sm:$0xff] }
 0x34d   : > { %3332 = vmatmul.mubr.msk.f32.vlgmr.msra.gmra.mxu0 %vm501_vm2, %v587_v38 }
 0x34e   : > { %3335 = vmatpush3.xpose.msk.msra.mxu0 %vm501_vm2, %v664_v35  ;;  %3336 = vmatprep.mubr.msk.f32.mxu0 %vm3624_vm0, %v3623_v1 }
 0x34f   : > { %3344 = vmatprep.subr.mxu0 %v3623_v1 }
 0x351   : > { %3337 = vmatmul.mubr.msk.f32.vlgmr.msra.gmra.mxu0 %vm501_vm2, %v662_v39 }
 0x352   : > { %3346 = vmatprep.mubr.msk.f32.mxu0 %vm3624_vm0, %v3623_v1  ;;  %3345 = vmatpush3.msra.mxu0 %v325_v51 }
 0x353   : > { %3354 = vmatprep.subr.mxu0 %v3623_v1 }
 0x40d   : > { %v657_v40 = vpop.f32.mrf.mxu0 }
 0x40f   : > { %v3333_v41 = vpop.f32.mrf.mxu0 }
 0x411   : > { %v735_v42 = vpop.f32.mrf.mxu0 }
 0x412   : > { %v739_v43 = vmul.f32 0.35355338, %v735_v42 }
 0x413   : > { %v3338_v44 = vpop.f32.mrf.mxu0 }
 0x414   : > { %v740_v45 = vsel %vm501_vm2, %v739_v43, -inf }
 0x415   : > { %741 = vmax.xlane.f32.xlu1 %v740_v45 }
 0x426   : > { %974 = vrot.lane.b32.xlu1 %v3756_v14, %s3628_s29 }
 0x49e   : > { %v742_v46 = vpop.xlane.xlu1 %741 }
 0x49f   : > { %v743_v47 = vsub.f32 %v739_v43, %v742_v46  ;;  %v1456_v46 = vsub.s32 2, %v3745_v9 }
 0x4a1   : > { %v744_v48 = vmul.f32 1.442695, %v743_v47  ;;  %v1457_v47 = vrot.slane %v3751_v11, %v1456_v46 }
 0x4a2   : > { %v975_v60 = vpop.permute.xlu1 %974 }
 0x4a3   : > { %3563 = vpow2.f32 %v744_v48 }
 0x4b0   : > { %v3564_v49 = vpop.eup %3563 }
 0x4b1   : > { %v746_v50 = vsel %vm501_vm2, %v3564_v49, 0.0 }
 0x4b2   : > { %747 = vadd.xlane.f32.xlu0 %v746_v50 }
 0x4c8   : > { %752 = vrot.lane.b32.xlu0 %v3796_v34, %s3627_s26 }
 0x4cc   : > { %976 = vrot.lane.b32.xlu0 %v3756_v14, %s3629_s10 }
 0x53b   : > { %v748_v52 = vpop.xlane.xlu0 %747 }
 0x53c   : > { %3565 = vrcp.f32 %v748_v52 }
 0x53f   : > { %v753_v53 = vpop.permute.xlu0 %752 }
 0x540   : > { %3340 = vmatpush3.msra.mxu1 %v753_v53 }
 0x541   : > { %3349 = vmatprep.subr.mxu1 %v3623_v1 }
 0x543   : > { %v977_v58 = vpop.permute.xlu0 %976 }
 0x549   : > { %v3566_v54 = vpop.eup %3565 }
 0x54a   : > { %v750_v55 = vmul.f32 %v3566_v54, %v3564_v49 }
 0x54c   : > { %3342 = vmatmul.mubr.msk.f32.vlgmr.msra.gmra.mxu1 %vm501_vm2, %v750_v55 }
 0x54d   : > { %3350 = vmatpush3.msra.mxu1 %v324_v56  ;;  %3351 = vmatprep.mubr.msk.f32.mxu1 %vm3624_vm0, %v3623_v1 }
 0x54e   : > { %3359 = vmatprep.subr.mxu1 %v3623_v1 }
 0x550   : > { %3352 = vmatmul.mubr.msk.f32.vlgmr.msra.gmra.mxu1 %vm501_vm2, %v657_v40 }
 0x551   : > { %3361 = vmatprep.mubr.msk.f32.mxu1 %vm3624_vm0, %v3623_v1 }
 0x60c   : > { %v824_v57 = vpop.f32.mrf.mxu1 }
 0x60d   : > { %3347 = vmatmul.mubr.msk.f32.vlgmr.msra.gmra.mxu0 %vm501_vm2, %v824_v57 }
 0x60e   : > { %3355 = vmatpush3.xpose.msk.msra.mxu0 %vm501_vm2, %v977_v58  ;;  %v3343_v59 = vpop.f32.mrf.mxu1  ;;  %3356 = vmatprep.mubr.msk.f32.mxu0 %vm3624_vm0, %v3623_v1 }
 0x60f   : > { %3364 = vmatprep.subr.mxu0 %v3623_v1  ;;  %v331_v59 = vld [vmem:[%s4221_s5 + $0x18] sm:$0xff] }
 0x610   : > { %v970_v61 = vpop.f32.mrf.mxu1 }
 0x611   : > { %3357 = vmatmul.mubr.msk.f32.vlgmr.msra.gmra.mxu0 %vm501_vm2, %v975_v60  ;;  %v330_v60 = vld [vmem:[%s4221_s5 + $0x10] sm:$0xff] }
 0x612   : > { %v3353_v62 = vpop.f32.mrf.mxu1  ;;  %3366 = vmatprep.mubr.msk.f32.mxu0 %vm3624_vm0, %v3623_v1 }
 0x613   : > { %v339_v62 = vld [vmem:[%s4222_s6 + $0x38] sm:$0xff] }
 0x6cd   : > { %v897_v63 = vpop.f32.mrf.mxu0 }
 0x6ce   : > { %v971_v38 = vadd.f32 %v970_v61, %v897_v63  ;;  %v328_v61 = vld [vmem:[%s4221_s5] sm:$0xff]  ;;  %v338_v63 = vld [vmem:[%s4222_s6 + $0x30] sm:$0xff] }
 0x6cf   : > { %v3348_v0 = vpop.f32.mrf.mxu0 }
 0x6d0   : > { %v337_v0 = vld [vmem:[%s4222_s6 + $0x28] sm:$0xff] }
 0x6d1   : > { %v1048_v2 = vpop.f32.mrf.mxu0 }
 0x6d2   : > { %v1052_v3 = vmul.f32 0.35355338, %v1048_v2  ;;  %v336_v2 = vld [vmem:[%s4222_s6 + $0x20] sm:$0xff] }
 0x6d3   : > { %v3358_v4 = vpop.f32.mrf.mxu0 }
 0x6d4   : > { %v1053_v7 = vsel %vm501_vm2, %v1052_v3, -inf }
 0x6d5   : > { %1054 = vmax.xlane.f32.xlu0 %v1053_v7 }
 0x6eb   : > { %1064 = vrot.lane.b32.xlu0 %v3796_v34, %s3628_s29 }
 0x6ef   : > { %1214 = vrot.lane.b32.xlu0 %v3756_v14, %s3630_s19 }
 0x75e   : > { %v1055_v8 = vpop.xlane.xlu0 %1054 }
 0x75f   : > { %v1056_v12 = vsub.f32 %v1052_v3, %v1055_v8  ;;  %v335_v3 = vld [vmem:[%s4222_s6 + $0x18] sm:$0xff] }
 0x761   : > { %v1057_v13 = vmul.f32 1.442695, %v1056_v12  ;;  %v1476_v12 = vsub.s32 5, %v3745_v9 }
 0x762   : > { %v1065_v15 = vpop.permute.xlu0 %1064 }
 0x763   : > { %3567 = vpow2.f32 %v1057_v13  ;;  %3360 = vmatpush3.msra.mxu1 %v1065_v15  ;;  %v1481_v13 = vsub.s32 6, %v3745_v9  ;;  %v1477_v15 = vrot.slane %v3751_v11, %v1476_v12 }
 0x764   : > { %3369 = vmatprep.subr.mxu1 %v3623_v1 }
 0x766   : > { %v1215_v22 = vpop.permute.xlu0 %1214 }
 0x770   : > { %v3568_v16 = vpop.eup %3567 }
 0x771   : > { %v1059_v17 = vsel %vm501_vm2, %v3568_v16, 0.0 }
 0x772   : > { %1060 = vadd.xlane.f32.xlu1 %v1059_v17 }
 0x783   : > { %1216 = vrot.lane.b32.xlu1 %v3756_v14, %s3631_s20  ;;  %v326_v14 = vld [vmem:[%s4220_s4 + $0x10] sm:$0xff] }
 0x784   : > { %3365 = vmatpush3.msra.mxu0 %v326_v14  ;;  %v332_v14 = vld [vmem:[%s4222_s6] sm:$0xff] }
 0x785   : > { %3374 = vmatprep.subr.mxu0 %v3623_v1 }
 0x7fb   : > { %v1061_v18 = vpop.xlane.xlu1 %1060 }
 0x7fc   : > { %3569 = vrcp.f32 %v1061_v18  ;;  %v1482_v18 = vrot.slane %v3751_v11, %v1481_v13 }
 0x7ff   : > { %v1217_v21 = vpop.permute.xlu1 %1216 }
 0x809   : > { %v3570_v19 = vpop.eup %3569 }
 0x80a   : > { %v1063_v20 = vmul.f32 %v3570_v19, %v3568_v16 }
 0x80c   : > { %3362 = vmatmul.mubr.msk.f32.vlgmr.msra.gmra.mxu1 %vm501_vm2, %v1063_v20 }
 0x80d   : > { %3370 = vmatpush3.xpose.msk.msra.mxu1 %vm501_vm2, %v1217_v21  ;;  %3371 = vmatprep.mubr.msk.f32.mxu1 %vm3624_vm0, %v3623_v1  ;;  %v334_v21 = vld [vmem:[%s4222_s6 + $0x10] sm:$0xff] }
 0x80e   : > { %3379 = vmatprep.subr.mxu1 %v3623_v1 }
 0x810   : > { %3372 = vmatmul.mubr.msk.f32.vlgmr.msra.gmra.mxu1 %vm501_vm2, %v1215_v22  ;;  %v333_v22 = vld [vmem:[%s4222_s6 + $0x8] sm:$0xff] }
 0x811   : > { %3381 = vmatprep.mubr.msk.f32.mxu1 %vm3624_vm0, %v3623_v1  ;;  %3380 = vmatpush3.msra.mxu1 %v327_v37 }
 0x812   : > { %3395 = vmatprep.subr.mxu1 %v3623_v1 }
 0x8cc   : > { %v1136_v23 = vpop.f32.mrf.mxu1 }
 0x8cd   : > { %3367 = vmatmul.mubr.msk.f32.vlgmr.msra.gmra.mxu0 %vm501_vm2, %v1136_v23  ;;  %v1486_v23 = vsub.s32 3, %v3745_v9 }
 0x8ce   : > { %v3363_v24 = vpop.f32.mrf.mxu1  ;;  %3376 = vmatprep.mubr.msk.f32.mxu0 %vm3624_vm0, %v3623_v1 }
 0x8cf   : > { %v1487_v24 = vrot.slane %v3751_v11, %v1486_v23 }
 0x8d0   : > { %v1288_v25 = vpop.f32.mrf.mxu1 }
 0x8d1   : > { %v1292_v26 = vmul.f32 0.35355338, %v1288_v25 }
 0x8d2   : > { %v3373_v27 = vpop.f32.mrf.mxu1 }
 0x8d3   : > { %v1293_v28 = vsel %vm501_vm2, %v1292_v26, -inf }
 0x8d4   : > { %1294 = vmax.xlane.f32.xlu0 %v1293_v28 }
 0x8ea   : > { %1304 = vrot.lane.b32.xlu0 %v3796_v34, %s3630_s19 }
 0x95d   : > { %v1295_v29 = vpop.xlane.xlu0 %1294 }
 0x95e   : > { %v1296_v31 = vsub.f32 %v1292_v26, %v1295_v29  ;;  %v1564_v29 = vsub.s32 4, %v3745_v9 }
 0x960   : > { %v1297_v32 = vmul.f32 1.442695, %v1296_v31  ;;  %v1565_v31 = vrot.slane %v3751_v11, %v1564_v29 }
 0x961   : > { %v1305_v33 = vpop.permute.xlu0 %1304 }
 0x962   : > { %3571 = vpow2.f32 %v1297_v32  ;;  %3375 = vmatpush3.msra.mxu0 %v1305_v33 }
 0x963   : > { %3384 = vmatprep.subr.mxu0 %v3623_v1 }
 0x96f   : > { %v3572_v35 = vpop.eup %3571 }
 0x970   : > { %v1299_v36 = vsel %vm501_vm2, %v3572_v35, 0.0 }
 0x971   : > { %1300 = vadd.xlane.f32.xlu1 %v1299_v36 }
 0x98d   : > { %v1209_v39 = vpop.f32.mrf.mxu0 }
 0x98e   : > { %v1213_v34 = vadd.f32 %v1209_v39, %v971_v38 }
 0x98f   : > { %v3368_v40 = vpop.f32.mrf.mxu0 }
 0x9fa   : > { %v1301_v41 = vpop.xlane.xlu1 %1300 }
 0x9fb   : > { %3573 = vrcp.f32 %v1301_v41 }
 0xa08   : > { %v3574_v42 = vpop.eup %3573 }
 0xa09   : > { %v1303_v43 = vmul.f32 %v3574_v42, %v3572_v35  ;;  %v3157_v42 = vld [vmem:[%s4218_s2 + $0x38] sm:$0xff] }
 0xa0b   : > { %3377 = vmatmul.mubr.msk.f32.vlgmr.msra.gmra.mxu0 %vm501_vm2, %v1303_v43  ;;  %v3156_v43 = vld [vmem:[%s4218_s2 + $0x30] sm:$0xff] }
 0xa0c   : > { %3392 = vmatprep.mubr.msk.f32.mxu0 %vm3624_vm0, %v3623_v1  ;;  %3385 = vmatpush3.msra.mxu0 %v331_v59  ;;  %v3158_v59 = vld [vmem:[%s4219_s3 + $0x20] sm:$0xff] }
 0xa0d   : > { %3386 = vmatprep.subr.mxu0 %v3623_v1 }
 0xa0e   : > { %3387 = vmatpush3.msra.mxu0 %v330_v60  ;;  %v4016_v60 = vld [vmem:[%s4223_s7 + $0x10] sm:$0xff] }
 0xa0f   : > { %3388 = vmatprep.subr.mxu0 %v3623_v1 }
 0xacb   : > { %v1376_v44 = vpop.f32.mrf.mxu0 }
 0xacc   : > { %3382 = vmatmul.mubr.msk.f32.vlgmr.msra.gmra.mxu1 %vm501_vm2, %v1376_v44  ;;  %v3155_v44 = vld [vmem:[%s4218_s2 + $0x28] sm:$0xff] }
 0xacd   : > { %v3378_v45 = vpop.f32.mrf.mxu0  ;;  %3411 = vmatprep.mubr.msk.f32.mxu1 %vm3624_vm0, %v3623_v1  ;;  %3396 = vmatpush3.msra.mxu1 %v339_v62 }
 0xace   : > { %3397 = vmatprep.subr.mxu1 %v3623_v1  ;;  %v3154_v45 = vld [vmem:[%s4218_s2 + $0x20] sm:$0xff] }
 0xacf   : > { %3398 = vmatpush3.msra.mxu1 %v338_v63 }
 0xad0   : > { %3399 = vmatprep.subr.mxu1 %v3623_v1 }
 0xad1   : > { %3400 = vmatpush3.msra.mxu1 %v337_v0 }
 0xad2   : > { %3401 = vmatprep.subr.mxu1 %v3623_v1 }
 0xad3   : > { %3402 = vmatpush3.msra.mxu1 %v336_v2 }
 0xad4   : > { %3403 = vmatprep.subr.mxu1 %v3623_v1 }
 0xad5   : > { %3404 = vmatpush3.msra.mxu1 %v335_v3  ;;  %v1778_v3 = vrot.slane %v4016_v60, %v423_v30 }
 0xad6   : > { %3405 = vmatprep.subr.mxu1 %v3623_v1 }
 0xad7   : > { %3406 = vmatpush3.msra.mxu1 %v334_v21 }
 0xad8   : > { %3407 = vmatprep.subr.mxu1 %v3623_v1 }
 0xad9   : > { %3408 = vmatpush3.msra.mxu1 %v333_v22 }
 0xada   : > { %3409 = vmatprep.subr.mxu1 %v3623_v1 }
 0xadb   : > { %3410 = vmatpush3.msra.mxu1 %v332_v14 }
 0xadc   : > { %3436 = vmatprep.subr.mxu1 %v3623_v1 }
 0xb8c   : > { %v1449_v48 = vpop.f32.mrf.mxu1 }
 0xb8d   : > { %v1453_v49 = vadd.f32 %v1449_v48, %v1213_v34 }
 0xb8e   : > { %v3383_v50 = vpop.f32.mrf.mxu1 }
 0xb8f   : > { %v1458_v51 = vadd.f32 %v1457_v47, %v1453_v49  ;;  %v1656_v50 = vsub.s32 7, %v3745_v9 }
 0xb91   : > { %v1459_v52 = vadd.f32 %v1458_v51, %v3734_v5  ;;  %v329_v5 = vld [vmem:[%s4221_s5 + $0x8] sm:$0xff]  ;;  %v1657_v51 = vrot.slane %v3751_v11, %v1656_v50  ;;  %v3160_v11 = vld [vmem:[%s4219_s3 + $0x30] sm:$0xff] }
 0xb92   : > { %3389 = vmatpush3.msra.mxu0 %v329_v5  ;;  %v1701_v5 = vrot.slane %v4016_v60, %v345_v10 }
 0xb93   : > { %v1460_v53 = vsel %vm347_vm1, %v1459_v52, 0.0  ;;  %3390 = vmatprep.subr.mxu0 %v3623_v1 }
 0xb94   : > { %1461 = vadd.xlane.f32.xlu1 %v1460_v53  ;;  %3391 = vmatpush3.msra.mxu0 %v328_v61 }
 0xb95   : > { %3414 = vmatprep.subr.mxu0 %v3623_v1 }
 0xc1d   : > { %v1462_v54 = vpop.xlane.xlu1 %1461 }
 0xc1e   : > { %v1464_v55 = vmul.f32 0.03125, %v1462_v54  ;;  %v3153_v54 = vld [vmem:[%s4223_s7 + $0x8] ss:$0 sm:$0xff] }
 0xc20   : > { %v1465_v56 = vsub.f32 %v1459_v52, %v1464_v55 }
 0xc22   : > { %v1466_v57 = vmul.f32 %v1465_v56, %v1465_v56 }
 0xc24   : > { %v1467_v58 = vsel %vm347_vm1, %v1466_v57, 0.0 }
 0xc25   : > { %1468 = vadd.xlane.f32.xlu1 %v1467_v58  ;;  %v3161_v58 = vld [vmem:[%s4219_s3 + $0x38] sm:$0xff] }
 0xcae   : > { %v1469_v4 = vpop.xlane.xlu1 %1468 }
 0xcaf   : > { %v1470_v7 = vmul.f32 0.03125, %v1469_v4 }
 0xcb1   : > { %v1471_v8 = vadd.f32 1e-05, %v1470_v7 }
 0xcb3   : > { %3575 = vrsqrt.f32 %v1471_v8 }
 0xcc0   : > { %v3576_v16 = vpop.eup %3575 }
 0xcc1   : > { %v1473_v17 = vmul.f32 %v3576_v16, %v1465_v56 }
 0xcc3   : > { %v1478_v19 = vmul.f32 %v1477_v15, %v1473_v17 }
 0xcc5   : > { %v1483_v20 = vadd.f32 %v1482_v18, %v1478_v19 }
 0xcc7   : > { %3393 = vmatmul.mubr.msk.f32.vlgmr.msra.gmra.mxu0 %vm347_vm1, %v1483_v20 }
 0xcc8   : > { %3422 = vmatprep.mubr.msk.f32.mxu0 %vm3624_vm0, %v3623_v1  ;;  %3415 = vmatpush3.msra.mxu0 %v3157_v42  ;;  %v3163_v42 = vld [vmem:[%s4220_s4 + $0x28] sm:$0xff] }
 0xcc9   : > { %3416 = vmatprep.subr.mxu0 %v3623_v1 }
 0xcca   : > { %3417 = vmatpush3.msra.mxu0 %v3156_v43 }
 0xccb   : > { %3418 = vmatprep.subr.mxu0 %v3623_v1 }
 0xccc   : > { %3419 = vmatpush3.msra.mxu0 %v3155_v44 }
 0xccd   : > { %3420 = vmatprep.subr.mxu0 %v3623_v1 }
 0xcce   : > { %3421 = vmatpush3.msra.mxu0 %v3154_v45 }
 0xccf   : > { %3425 = vmatprep.subr.mxu0 %v3623_v1 }
 0xd87   : > { %v1557_v25 = vpop.f32.mrf.mxu0 }
 0xd88   : > { %v1558_v26 = vadd.f32 %v1557_v25, %v1487_v24 }
 0xd89   : > { %v3394_v27 = vpop.f32.mrf.mxu0 }
 0xd8a   : > { %v1561_v28 = vmax.f32 %v1558_v26, 0.0 }
 0xd8c   : > { %3412 = vmatmul.mubr.msk.f32.vlgmr.msra.gmra.mxu1 %vm1566_vm3, %v1561_v28 }
 0xd8d   : > { %3438 = vmatprep.mubr.msk.f32.mxu1 %vm3624_vm0, %v3623_v1 }
 0xe4c   : > { %v1636_v32 = vpop.f32.mrf.mxu1 }
 0xe4d   : > { %v1637_v33 = vadd.f32 %v1636_v32, %v1565_v31 }
 0xe4e   : > { %v3413_v35 = vpop.f32.mrf.mxu1 }
 0xe4f   : > { %v1640_v36 = vadd.f32 %v1637_v33, %v1483_v20 }
 0xe51   : > { %v1641_v37 = vsel %vm347_vm1, %v1640_v36, 0.0 }
 0xe52   : > { %1642 = vadd.xlane.f32.xlu0 %v1641_v37 }
 0xedb   : > { %v1643_v38 = vpop.xlane.xlu0 %1642 }
 0xedc   : > { %v1644_v39 = vmul.f32 0.03125, %v1643_v38 }
 0xede   : > { %v1645_v34 = vsub.f32 %v1640_v36, %v1644_v39 }
 0xee0   : > { %v1646_v40 = vmul.f32 %v1645_v34, %v1645_v34 }
 0xee2   : > { %v1647_v41 = vsel %vm347_vm1, %v1646_v40, 0.0 }
 0xee3   : > { %1648 = vadd.xlane.f32.xlu1 %v1647_v41  ;;  %v3162_v41 = vld [vmem:[%s4220_s4 + $0x20] sm:$0xff] }
 0xf6c   : > { %v1649_v47 = vpop.xlane.xlu1 %1648 }
 0xf6d   : > { %v1650_v48 = vmul.f32 0.03125, %v1649_v47 }
 0xf6f   : > { %v1651_v49 = vadd.f32 1e-05, %v1650_v48 }
 0xf71   : > { %3577 = vrsqrt.f32 %v1651_v49 }
 0xf7e   : > { %v3578_v52 = vpop.eup %3577 }
 0xf7f   : > { %v1653_v53 = vmul.f32 %v3578_v52, %v1645_v34 }
 0xf81   : > { %v1658_v55 = vmul.f32 %v1657_v51, %v1653_v53 }
 0xf83   : > { %v3981_v56 = vadd.f32 %v3153_v54, %v1658_v55 }
 0xf85   : > { %v1697_v57 = vadd.f32 %v3981_v56, %v3736_v6  ;;  %1664 = vst.msk [vmem:[%s3988_s27] sm:$0xff] %vm347_vm1, %v3981_v56  ;;  %v3159_v6 = vld [vmem:[%s4219_s3 + $0x28] sm:$0xff] }
 0xf87   : > { %3423 = vmatmul.mubr.msk.f32.vlgmr.msra.gmra.mxu0 %vm347_vm1, %v1697_v57 }
 0xf88   : > { %3426 = vmatpush3.msra.mxu0 %v3161_v58  ;;  %3433 = vmatprep.mubr.msk.f32.mxu0 %vm3624_vm0, %v3623_v1 }
 0xf89   : > { %3427 = vmatprep.subr.mxu0 %v3623_v1 }
 0xf8a   : > { %3428 = vmatpush3.msra.mxu0 %v3160_v11 }
 0xf8b   : > { %3429 = vmatprep.subr.mxu0 %v3623_v1 }
 0xf8c   : > { %3430 = vmatpush3.msra.mxu0 %v3159_v6  ;;  %v3056_v9 = vld [vmem:[%s3988_s27] sm:$0xff] (%p3702_p4) }
 0xf8d   : > { %3431 = vmatprep.subr.mxu0 %v3623_v1 }
 0xf8e   : > { %3432 = vmatpush3.msra.mxu0 %v3158_v59 }
 0xf8f   : > { %3434 = vmatmul.mubr.msk.f32.vlgmr.msra.gmra.mxu0 %vm347_vm1, %v3981_v56  ;;  %3446 = vmatprep.subr.mxu0 %v3623_v1 }
 0xf90   : > { %3448 = vmatprep.mubr.msk.f32.mxu0 %vm3624_vm0, %v3623_v1 }
0x1047   : > { %v1771_v61 = vpop.f32.mrf.mxu0 }
0x1048   : > { %v4021_v62 = vadd.f32 %v1771_v61, %v1701_v5 }
0x1049   : > { %v3424_v63 = vpop.f32.mrf.mxu0 }
0x104a   : > { %1853 = vrot.lane.b32.xlu1 %v4021_v62, %s3626_s17 }
0x104e   : > { %2016 = vrot.lane.b32.xlu1 %v4021_v62, %s3625_s16 }
0x104f   : > { %v1848_v0 = vpop.f32.mrf.mxu0 }
0x1050   : > { %v4034_v4 = vadd.f32 %v1848_v0, %v1778_v3 }
0x1051   : > { %v3435_v2 = vpop.f32.mrf.mxu0 }
0x1052   : > { %2014 = vrot.lane.b32.xlu1 %v4021_v62, %s3627_s26 }
0x10bc   : > { %v1854_v10 = vpop.permute.xlu1 %1853 }
0x10bd   : > { %3437 = vmatpush3.xpose.msk.msra.mxu1 %vm501_vm2, %v1854_v10 }
0x10be   : > { %3441 = vmatprep.subr.mxu1 %v3623_v1 }
0x10c0   : > { %3439 = vmatmul.mubr.msk.f32.vlgmr.msra.gmra.mxu1 %vm501_vm2, %v4021_v62  ;;  %v2017_v7 = vpop.permute.xlu1 %2016 }
0x10c1   : > { %3442 = vmatpush3.msra.mxu1 %v4034_v4  ;;  %3447 = vmatpush3.xpose.msk.msra.mxu0 %vm501_vm2, %v2017_v7 }
0x10c2   : > { %3443 = vmatprep.mubr.msk.f32.mxu1 %vm3624_vm0, %v3623_v1  ;;  %3451 = vmatprep.subr.mxu1 %v3623_v1 }
0x10c3   : > { %3456 = vmatprep.subr.mxu0 %v3623_v1 }
0x10c4   : > { %v2015_v30 = vpop.permute.xlu1 %2014 }
0x10c5   : > { %3449 = vmatmul.mubr.msk.f32.vlgmr.msra.gmra.mxu0 %vm501_vm2, %v2015_v30 }
0x10c6   : > { %3458 = vmatprep.mubr.msk.f32.mxu0 %vm3624_vm0, %v3623_v1  ;;  %3457 = vmatpush3.msra.mxu0 %v3163_v42 }
0x10c7   : > { %3466 = vmatprep.subr.mxu0 %v3623_v1 }
0x1180   : > { %v1925_v8 = vpop.f32.mrf.mxu1 }
0x1181   : > { %v1929_v15 = vmul.f32 0.35355338, %v1925_v8 }
0x1182   : > { %v3440_v16 = vpop.f32.mrf.mxu1 }
0x1183   : > { %v1930_v17 = vsel %vm501_vm2, %v1929_v15, -inf }
0x1184   : > { %1931 = vmax.xlane.f32.xlu1 %v1930_v17 }
0x1185   : > { %v2088_v18 = vpop.f32.mrf.mxu0 }
0x1186   : > { %v2092_v19 = vmul.f32 0.35355338, %v2088_v18 }
0x1187   : > { %v3450_v20 = vpop.f32.mrf.mxu0 }
0x1188   : > { %v2093_v21 = vsel %vm501_vm2, %v2092_v19, -inf }
0x1189   : > { %2094 = vmax.xlane.f32.xlu0 %v2093_v21 }
0x1195   : > { %2327 = vrot.lane.b32.xlu1 %v4021_v62, %s3628_s29 }
0x120d   : > { %v1932_v22 = vpop.xlane.xlu1 %1931 }
0x120e   : > { %v1933_v14 = vsub.f32 %v1929_v15, %v1932_v22 }
0x1210   : > { %v1934_v24 = vmul.f32 1.442695, %v1933_v14 }
0x1211   : > { %v2328_v49 = vpop.permute.xlu1 %2327 }
0x1212   : > { %3579 = vpow2.f32 %v1934_v24  ;;  %v2095_v25 = vpop.xlane.xlu0 %2094 }
0x1213   : > { %v2096_v26 = vsub.f32 %v2092_v19, %v2095_v25 }
0x1215   : > { %v2097_v27 = vmul.f32 1.442695, %v2096_v26 }
0x1217   : > { %3581 = vpow2.f32 %v2097_v27  ;;  %v3165_v27 = vld [vmem:[%s4220_s4 + $0x38] sm:$0xff] }
0x121f   : > { %v3580_v28 = vpop.eup %3579 }
0x1220   : > { %v1936_v31 = vsel %vm501_vm2, %v3580_v28, 0.0 }
0x1221   : > { %1937 = vadd.xlane.f32.xlu0 %v1936_v31 }
0x1224   : > { %v3582_v32 = vpop.eup %3581 }
0x1225   : > { %v2099_v33 = vsel %vm501_vm2, %v3582_v32, 0.0 }
0x1226   : > { %2100 = vadd.xlane.f32.xlu0 %v2099_v33 }
0x123c   : > { %2105 = vrot.lane.b32.xlu0 %v4034_v4, %s3627_s26  ;;  %s3203_s26 = sshll.u32 (%p3702_p4), %s3690_s30, 3 }
0x1240   : > { %2329 = vrot.lane.b32.xlu0 %v4021_v62, %s3629_s10 }
0x12aa   : > { %v1938_v35 = vpop.xlane.xlu0 %1937 }
0x12ab   : > { %3583 = vrcp.f32 %v1938_v35 }
0x12af   : > { %v2101_v36 = vpop.xlane.xlu0 %2100 }
0x12b0   : > { %3585 = vrcp.f32 %v2101_v36 }
0x12b3   : > { %v2106_v39 = vpop.permute.xlu0 %2105 }
0x12b7   : > { %v2330_v47 = vpop.permute.xlu0 %2329 }
0x12b8   : > { %v3584_v37 = vpop.eup %3583 }
0x12b9   : > { %v1940_v38 = vmul.f32 %v3584_v37, %v3580_v28 }
0x12bb   : > { %3444 = vmatmul.mubr.msk.f32.vlgmr.msra.gmra.mxu1 %vm501_vm2, %v1940_v38  ;;  %v2810_v38 = vrot.slane %v4016_v60, %v1456_v46  ;;  %v3169_v46 = vld [vmem:[%s4221_s5 + $0x38] sm:$0xff] }
0x12bc   : > { %3452 = vmatpush3.msra.mxu1 %v2106_v39  ;;  %3453 = vmatprep.mubr.msk.f32.mxu1 %vm3624_vm0, %v3623_v1 }
0x12bd   : > { %v3586_v34 = vpop.eup %3585  ;;  %3461 = vmatprep.subr.mxu1 %v3623_v1 }
0x12be   : > { %v2103_v40 = vmul.f32 %v3586_v34, %v3582_v32 }
0x12c0   : > { %3454 = vmatmul.mubr.msk.f32.vlgmr.msra.gmra.mxu1 %vm501_vm2, %v2103_v40 }
0x12c1   : > { %3463 = vmatprep.mubr.msk.f32.mxu1 %vm3624_vm0, %v3623_v1  ;;  %3462 = vmatpush3.msra.mxu1 %v3162_v41 }
0x12c2   : > { %3471 = vmatprep.subr.mxu1 %v3623_v1 }
0x137b   : > { %v2010_v43 = vpop.f32.mrf.mxu1 }
0x137c   : > { %3464 = vmatmul.mubr.msk.f32.vlgmr.msra.gmra.mxu1 %vm501_vm2, %v2010_v43 }
0x137d   : > { %v3445_v44 = vpop.f32.mrf.mxu1  ;;  %3473 = vmatprep.mubr.msk.f32.mxu1 %vm3624_vm0, %v3623_v1 }
0x1380   : > { %v2177_v45 = vpop.f32.mrf.mxu1 }
0x1381   : > { %3459 = vmatmul.mubr.msk.f32.vlgmr.msra.gmra.mxu0 %vm501_vm2, %v2177_v45 }
0x1382   : > { %3467 = vmatpush3.xpose.msk.msra.mxu0 %vm501_vm2, %v2330_v47  ;;  %v3455_v48 = vpop.f32.mrf.mxu1  ;;  %3468 = vmatprep.mubr.msk.f32.mxu0 %vm3624_vm0, %v3623_v1 }
0x1383   : > { %3476 = vmatprep.subr.mxu0 %v3623_v1 }
0x1385   : > { %3469 = vmatmul.mubr.msk.f32.vlgmr.msra.gmra.mxu0 %vm501_vm2, %v2328_v49 }
0x1386   : > { %3478 = vmatprep.mubr.msk.f32.mxu0 %vm3624_vm0, %v3623_v1 }
0x143c   : > { %v2323_v51 = vpop.f32.mrf.mxu1 }
0x143e   : > { %v3465_v52 = vpop.f32.mrf.mxu1 }
0x143f   : > { %v3166_v52 = vld [vmem:[%s4221_s5 + $0x20] sm:$0xff] }
0x1441   : > { %v2250_v53 = vpop.f32.mrf.mxu0 }
0x1442   : > { %v2324_v54 = vadd.f32 %v2323_v51, %v2250_v53  ;;  %v3168_v51 = vld [vmem:[%s4221_s5 + $0x30] sm:$0xff]  ;;  %v3177_v53 = vld [vmem:[%s4222_s6 + $0x78] sm:$0xff] }
0x1443   : > { %v3460_v55 = vpop.f32.mrf.mxu0 }
0x1444   : > { %v3175_v55 = vld [vmem:[%s4222_s6 + $0x68] sm:$0xff] }
0x1445   : > { %v2401_v57 = vpop.f32.mrf.mxu0 }
0x1446   : > { %v2405_v58 = vmul.f32 0.35355338, %v2401_v57  ;;  %v3174_v57 = vld [vmem:[%s4222_s6 + $0x60] sm:$0xff] }
0x1447   : > { %v3470_v11 = vpop.f32.mrf.mxu0 }
0x1448   : > { %v2406_v6 = vsel %vm501_vm2, %v2405_v58, -inf }
0x1449   : > { %2407 = vmax.xlane.f32.xlu0 %v2406_v6 }
0x145f   : > { %2417 = vrot.lane.b32.xlu0 %v4034_v4, %s3628_s29 }
0x1463   : > { %2567 = vrot.lane.b32.xlu0 %v4021_v62, %s3630_s19 }
0x14d2   : > { %v2408_v59 = vpop.xlane.xlu0 %2407 }
0x14d3   : > { %v2409_v5 = vsub.f32 %v2405_v58, %v2408_v59  ;;  %v3173_v58 = vld [vmem:[%s4222_s6 + $0x58] sm:$0xff] }
0x14d5   : > { %v2410_v61 = vmul.f32 1.442695, %v2409_v5  ;;  %v2829_v5 = vrot.slane %v4016_v60, %v1476_v12  ;;  %v3171_v12 = vld [vmem:[%s4222_s6 + $0x48] sm:$0xff] }
0x14d6   : > { %v2418_v63 = vpop.permute.xlu0 %2417 }
0x14d7   : > { %3587 = vpow2.f32 %v2410_v61  ;;  %3472 = vmatpush3.msra.mxu1 %v2418_v63 }
0x14d8   : > { %3481 = vmatprep.subr.mxu1 %v3623_v1 }
0x14da   : > { %v2568_v8 = vpop.permute.xlu0 %2567 }
0x14e4   : > { %v3588_v0 = vpop.eup %3587 }
0x14e5   : > { %v2412_v2 = vsel %vm501_vm2, %v3588_v0, 0.0 }
0x14e6   : > { %2413 = vadd.xlane.f32.xlu1 %v2412_v2 }
0x14f7   : > { %2569 = vrot.lane.b32.xlu1 %v4021_v62, %s3631_s20  ;;  %v3164_v62 = vld [vmem:[%s4220_s4 + $0x30] sm:$0xff]  ;;  %s3025_s20 = scalar_lea.vmem (%p3702_p4), %s4224_s8, %s3203_s26 }
0x14f8   : > { %3477 = vmatpush3.msra.mxu0 %v3164_v62  ;;  %3057 = vst [vmem:[%s3025_s20] sm:$0xff] (%p3702_p4), %v3056_v9 }
0x14f9   : > { %3486 = vmatprep.subr.mxu0 %v3623_v1 }
0x156f   : > { %v2414_v3 = vpop.xlane.xlu1 %2413 }
0x1570   : > { %3589 = vrcp.f32 %v2414_v3 }
0x1573   : > { %v2570_v30 = vpop.permute.xlu1 %2569 }
0x157d   : > { %v3590_v10 = vpop.eup %3589 }
0x157e   : > { %v2416_v7 = vmul.f32 %v3590_v10, %v3588_v0  ;;  %v2834_v0 = vrot.slane %v4016_v60, %v1481_v13  ;;  %v3172_v10 = vld [vmem:[%s4222_s6 + $0x50] sm:$0xff]  ;;  %v3170_v13 = vld [vmem:[%s4222_s6 + $0x40] sm:$0xff] }
0x1580   : > { %3474 = vmatmul.mubr.msk.f32.vlgmr.msra.gmra.mxu1 %vm501_vm2, %v2416_v7  ;;  %v2839_v7 = vrot.slane %v4016_v60, %v1486_v23 }
0x1581   : > { %3482 = vmatpush3.xpose.msk.msra.mxu1 %vm501_vm2, %v2570_v30  ;;  %3483 = vmatprep.mubr.msk.f32.mxu1 %vm3624_vm0, %v3623_v1 }
0x1582   : > { %3491 = vmatprep.subr.mxu1 %v3623_v1 }
0x1584   : > { %3484 = vmatmul.mubr.msk.f32.vlgmr.msra.gmra.mxu1 %vm501_vm2, %v2568_v8 }
0x1585   : > { %3493 = vmatprep.mubr.msk.f32.mxu1 %vm3624_vm0, %v3623_v1  ;;  %3492 = vmatpush3.msra.mxu1 %v3165_v27 }
0x1586   : > { %3507 = vmatprep.subr.mxu1 %v3623_v1 }
0x1640   : > { %v2489_v15 = vpop.f32.mrf.mxu1 }
0x1641   : > { %3479 = vmatmul.mubr.msk.f32.vlgmr.msra.gmra.mxu0 %vm501_vm2, %v2489_v15 }
0x1642   : > { %v3475_v16 = vpop.f32.mrf.mxu1  ;;  %3488 = vmatprep.mubr.msk.f32.mxu0 %vm3624_vm0, %v3623_v1 }
0x1643   : > { %v2917_v16 = vrot.slane %v4016_v60, %v1564_v29  ;;  %v3008_v29 = vrot.slane %v4016_v60, %v1656_v50 }
0x1644   : > { %v2641_v17 = vpop.f32.mrf.mxu1 }
0x1645   : > { %v2645_v18 = vmul.f32 0.35355338, %v2641_v17 }
0x1646   : > { %v3485_v19 = vpop.f32.mrf.mxu1 }
0x1647   : > { %v2646_v20 = vsel %vm501_vm2, %v2645_v18, -inf }
0x1648   : > { %2647 = vmax.xlane.f32.xlu0 %v2646_v20 }
0x165e   : > { %2657 = vrot.lane.b32.xlu0 %v4034_v4, %s3630_s19 }
0x16d1   : > { %v2648_v21 = vpop.xlane.xlu0 %2647 }
0x16d2   : > { %v2649_v22 = vsub.f32 %v2645_v18, %v2648_v21 }
0x16d4   : > { %v2650_v14 = vmul.f32 1.442695, %v2649_v22 }
0x16d5   : > { %v2658_v24 = vpop.permute.xlu0 %2657 }
0x16d6   : > { %3591 = vpow2.f32 %v2650_v14  ;;  %3487 = vmatpush3.msra.mxu0 %v2658_v24 }
0x16d7   : > { %3496 = vmatprep.subr.mxu0 %v3623_v1 }
0x16e3   : > { %v3592_v25 = vpop.eup %3591 }
0x16e4   : > { %v2652_v26 = vsel %vm501_vm2, %v3592_v25, 0.0 }
0x16e5   : > { %2653 = vadd.xlane.f32.xlu1 %v2652_v26 }
0x1701   : > { %v2562_v28 = vpop.f32.mrf.mxu0 }
0x1702   : > { %v2566_v4 = vadd.f32 %v2562_v28, %v2324_v54  ;;  %v3176_v54 = vld [vmem:[%s4222_s6 + $0x70] sm:$0xff] }
0x1703   : > { %v3480_v31 = vpop.f32.mrf.mxu0 }
0x1704   : > { %v3200_v31 = vld [vmem:[%s4223_s7 + $0x18] ss:$0 sm:$0xff] }
0x176e   : > { %v2654_v32 = vpop.xlane.xlu1 %2653 }
0x176f   : > { %3593 = vrcp.f32 %v2654_v32 }
0x177c   : > { %v3594_v33 = vpop.eup %3593 }
0x177d   : > { %v2656_v35 = vmul.f32 %v3594_v33, %v3592_v25 }
0x177f   : > { %3489 = vmatmul.mubr.msk.f32.vlgmr.msra.gmra.mxu0 %vm501_vm2, %v2656_v35 }
0x1780   : > { %3504 = vmatprep.mubr.msk.f32.mxu0 %vm3624_vm0, %v3623_v1  ;;  %3497 = vmatpush3.msra.mxu0 %v3169_v46 }
0x1781   : > { %3498 = vmatprep.subr.mxu0 %v3623_v1 }
0x1782   : > { %3499 = vmatpush3.msra.mxu0 %v3168_v51 }
0x1783   : > { %3500 = vmatprep.subr.mxu0 %v3623_v1 }
0x183f   : > { %v2729_v36 = vpop.f32.mrf.mxu0 }
0x1840   : > { %3494 = vmatmul.mubr.msk.f32.vlgmr.msra.gmra.mxu1 %vm501_vm2, %v2729_v36 }
0x1841   : > { %v3490_v37 = vpop.f32.mrf.mxu0  ;;  %3523 = vmatprep.mubr.msk.f32.mxu1 %vm3624_vm0, %v3623_v1  ;;  %3508 = vmatpush3.msra.mxu1 %v3177_v53 }
0x1842   : > { %3509 = vmatprep.subr.mxu1 %v3623_v1 }
0x1843   : > { %3510 = vmatpush3.msra.mxu1 %v3176_v54 }
0x1844   : > { %3511 = vmatprep.subr.mxu1 %v3623_v1 }
0x1845   : > { %3512 = vmatpush3.msra.mxu1 %v3175_v55 }
0x1846   : > { %3513 = vmatprep.subr.mxu1 %v3623_v1 }
0x1847   : > { %3514 = vmatpush3.msra.mxu1 %v3174_v57 }
0x1848   : > { %3515 = vmatprep.subr.mxu1 %v3623_v1 }
0x1849   : > { %3516 = vmatpush3.msra.mxu1 %v3173_v58 }
0x184a   : > { %3517 = vmatprep.subr.mxu1 %v3623_v1 }
0x184b   : > { %3518 = vmatpush3.msra.mxu1 %v3172_v10 }
0x184c   : > { %3519 = vmatprep.subr.mxu1 %v3623_v1 }
0x184d   : > { %3520 = vmatpush3.msra.mxu1 %v3171_v12 }
0x184e   : > { %3521 = vmatprep.subr.mxu1 %v3623_v1 }
0x184f   : > { %3522 = vmatpush3.msra.mxu1 %v3170_v13 }
0x1900   : > { %v2802_v39 = vpop.f32.mrf.mxu1 }
0x1901   : > { %v2806_v34 = vadd.f32 %v2802_v39, %v2566_v4 }
0x1902   : > { %v3495_v40 = vpop.f32.mrf.mxu1 }
0x1903   : > { %v2811_v41 = vadd.f32 %v2810_v38, %v2806_v34 }
0x1905   : > { %v2812_v42 = vadd.f32 %v2811_v41, %v3981_v56  ;;  %v3167_v56 = vld [vmem:[%s4221_s5 + $0x28] sm:$0xff] }
0x1906   : > { %3501 = vmatpush3.msra.mxu0 %v3167_v56 }
0x1907   : > { %v2813_v43 = vsel %vm347_vm1, %v2812_v42, 0.0  ;;  %3502 = vmatprep.subr.mxu0 %v3623_v1 }
0x1908   : > { %2814 = vadd.xlane.f32.xlu1 %v2813_v43  ;;  %3503 = vmatpush3.msra.mxu0 %v3166_v52 }
0x1991   : > { %v2815_v44 = vpop.xlane.xlu1 %2814 }
0x1992   : > { %v2816_v45 = vmul.f32 0.03125, %v2815_v44 }
0x1994   : > { %v2817_v47 = vsub.f32 %v2812_v42, %v2816_v45 }
0x1996   : > { %v2818_v48 = vmul.f32 %v2817_v47, %v2817_v47 }
0x1998   : > { %v2819_v49 = vsel %vm347_vm1, %v2818_v48, 0.0 }
0x1999   : > { %2820 = vadd.xlane.f32.xlu1 %v2819_v49 }
0x1a22   : > { %v2821_v11 = vpop.xlane.xlu1 %2820 }
0x1a23   : > { %v2822_v6 = vmul.f32 0.03125, %v2821_v11 }
0x1a25   : > { %v2823_v59 = vadd.f32 1e-05, %v2822_v6 }
0x1a27   : > { %3595 = vrsqrt.f32 %v2823_v59 }
0x1a34   : > { %v3596_v61 = vpop.eup %3595 }
0x1a35   : > { %v2825_v63 = vmul.f32 %v3596_v61, %v2817_v47 }
0x1a37   : > { %v2830_v2 = vmul.f32 %v2829_v5, %v2825_v63 }
0x1a39   : > { %v2835_v3 = vadd.f32 %v2834_v0, %v2830_v2 }
0x1a3b   : > { %3505 = vmatmul.mubr.msk.f32.vlgmr.msra.gmra.mxu0 %vm347_vm1, %v2835_v3 }
0x1afb   : > { %v2909_v30 = vpop.f32.mrf.mxu0 }
0x1afc   : > { %v2910_v8 = vadd.f32 %v2909_v30, %v2839_v7 }
0x1afd   : > { %v3506_v62 = vpop.f32.mrf.mxu0 }
0x1afe   : > { %v2913_v15 = vmax.f32 %v2910_v8, 0.0 }
0x1b00   : > { %3524 = vmatmul.mubr.msk.f32.vlgmr.msra.gmra.mxu1 %vm1566_vm3, %v2913_v15 }
0x1bc0   : > { %v2987_v17 = vpop.f32.mrf.mxu1 }
0x1bc1   : > { %v2988_v18 = vadd.f32 %v2987_v17, %v2917_v16 }
0x1bc2   : > { %v3525_v19 = vpop.f32.mrf.mxu1 }
0x1bc3   : > { %v2991_v20 = vadd.f32 %v2988_v18, %v2835_v3 }
0x1bc5   : > { %v2992_v1 = vsel %vm347_vm1, %v2991_v20, 0.0 }
0x1bc6   : > { %2993 = vadd.xlane.f32.xlu0 %v2992_v1 }
0x1c4f   : > { %v2994_v21 = vpop.xlane.xlu0 %2993 }
0x1c50   : > { %v2995_v23 = vmul.f32 0.03125, %v2994_v21 }
0x1c52   : > { %v2996_v22 = vsub.f32 %v2991_v20, %v2995_v23 }
0x1c54   : > { %v2997_v14 = vmul.f32 %v2996_v22, %v2996_v22 }
0x1c56   : > { %v2998_v24 = vsel %vm347_vm1, %v2997_v14, 0.0 }
0x1c57   : > { %2999 = vadd.xlane.f32.xlu1 %v2998_v24 }
0x1ce0   : > { %v3000_v25 = vpop.xlane.xlu1 %2999 }
0x1ce1   : > { %v3001_v26 = vmul.f32 0.03125, %v3000_v25 }
0x1ce3   : > { %v3002_v27 = vadd.f32 1e-05, %v3001_v26 }
0x1ce5   : > { %3597 = vrsqrt.f32 %v3002_v27 }
0x1cf2   : > { %v3598_v28 = vpop.eup %3597 }
0x1cf3   : > { %v3004_v4 = vmul.f32 %v3598_v28, %v2996_v22 }
0x1cf5   : > { %v3009_v32 = vmul.f32 %v3008_v29, %v3004_v4  ;;  %3023 = sbr.rel (!%p3702_p4) target bundleno = 7426 (0x1d02), region = 56 }
0x1cf7   : > { %v3014_v33 = vadd.f32 %v3200_v31, %v3009_v32 }
0x1cf9   : > { %3201 = vst.msk [vmem:[%s3988_s27 + $0x8] sm:$0xff] %vm347_vm1, %v3014_v33 }
0x1d00   : > { %v3058_v35 = vld [vmem:[%s3988_s27 + $0x8] sm:$0xff] }
0x1d01   : > { %3059 = vst [vmem:[%s3025_s20 + $0x10] sm:$0xff] %v3058_v35 }
0x1d02 PF: > { %p15_p8 = scmp.ge.s32.totalorder %s3692_s9, 4   ;;  %s4226_s27 = smov %s3617_s28 }
0x1d03   : > { %s4227_s28 = smov %s3700_s12  ;;  %s4228_s29 = smov %s3692_s9 }
0x1d04   :  { %17 = sbr.rel (!%p15_p8) target bundleno = 2 (0x2), region = 130 }

</bundles_post_ra>
